<compile_context>
chip_gen: v7x
topology: tpu7x:2x2x1
jax: 0.10.0
libtpu: 0.0.40
codegen_flags: <defaults>
</compile_context>

<pallas_src>
import functools

import jax
import jax.numpy as jnp
from jax.experimental import pallas as pl
from jax.experimental.pallas import tpu as pltpu


# ----------------------------------------------------------------------------
# Fused kernel.
# ----------------------------------------------------------------------------
def _fused_cnn_kernel(x_ref, wb1_ref, b1_ref, wc2_ref, b2_ref, s2_ref,
                      fcw_ref, fcb_ref, emb_ref, ls_ref, xp1_ref, xp2_ref,
                      *, C0, C1, C2, cdt):
    # x_ref  : (BB, H, W*C0)          lane-dense input slab (lanes = (w, c))
    # wb1_ref: (3, W*C0, W*C1)        banded conv1 weight (kw shift + W-pad folded in)
    # wc2_ref: (3, (W-1)*C1, W2*C2)   banded conv2 weight (+ layer-1 W-pool compaction)
    # s2_ref : ((W2-1)*C2, W4*C2)     exact 0/1 selection matrix (layer-2 W-pool)
    # emb_ref: (BB, H4, W4*C2)        lane-dense embedding output
    # ls_ref : (BB, 2*NC)             packed [logits | softmax]
    # xp1_ref: (BB, H+2,  W*C0)       H-padded conv1 input (VMEM scratch, f32)
    # xp2_ref: (BB, H2+2, (W-1)*C1)   H-padded pooled layer-1 (VMEM scratch, f32)
    f32 = jnp.float32
    BB, H, L0 = x_ref.shape
    W = L0 // C0
    H2, H4, W2, W4 = H // 2, H // 4, W // 2, W // 4
    L1 = W * C1                      # conv1 output lane width (lanes = (w, co))
    LU1 = (W - 1) * C1               # width of the W-pre-maxed layer-1 slab
    L2 = W2 * C2                     # conv2 output lane width
    LU2 = (W2 - 1) * C2

    # ---- conv1 input: interior rows + zero only the 2-row H border (cheap, megacore-safe).
    xp1_ref[:, 1:H + 1, :] = x_ref[...]
    xp1_ref[:, 0:1, :] = jnp.zeros((BB, 1, L0), xp1_ref.dtype)
    xp1_ref[:, H + 1:H + 2, :] = jnp.zeros((BB, 1, L0), xp1_ref.dtype)

    # ---- conv1: 3 accumulating banded matmuls (one per kh). No im2col / lane concat.
    acc1 = jnp.zeros((BB * H, L1), f32)
    for kh in range(3):
        lhs = xp1_ref[:, kh:kh + H, :].reshape(BB * H, L0).astype(cdt)
        acc1 = acc1 + jnp.dot(lhs, wb1_ref[kh], preferred_element_type=f32)
    a1 = jnp.maximum(acc1 + b1_ref[...], 0.0)                  # (BB*H, W*C1)

    # ---- pool1: H-pool = one rows->lanes reshape + max; W pre-max = overlapping
    #      lane-slice max. The W lane *compaction* is folded into wc2 (zero rows on
    #      odd w-blocks), so the don't-care odd blocks of u1 are never read.
    a1 = a1.reshape(BB * H2, 2 * L1)
    h1 = jnp.maximum(a1[:, :L1], a1[:, L1:])                    # (BB*H2, W*C1)
    u1 = jnp.maximum(h1[:, :LU1], h1[:, C1:])                   # even blocks = 2x2 max

    # ---- conv2 input: H padding only (W padding lives in wc2).
    xp2_ref[:, 1:H2 + 1, :] = u1.reshape(BB, H2, LU1)
    xp2_ref[:, 0:1, :] = jnp.zeros((BB, 1, LU1), xp2_ref.dtype)
    xp2_ref[:, H2 + 1:H2 + 2, :] = jnp.zeros((BB, 1, LU1), xp2_ref.dtype)

    acc2 = jnp.zeros((BB * H2, L2), f32)
    for kh in range(3):
        lhs = xp2_ref[:, kh:kh + H2, :].reshape(BB * H2, LU1).astype(cdt)
        acc2 = acc2 + jnp.dot(lhs, wc2_ref[kh], preferred_element_type=f32)
    a2 = jnp.maximum(acc2 + b2_ref[...], 0.0)                   # (BB*H2, W2*C2)

    # ---- pool2: same structure; the final lane compaction is an exact 0/1 selection
    #      matmul (MXU has slack; avoids a lane->sublane relayout + narrow intermediate).
    a2 = a2.reshape(BB * H4, 2 * L2)
    h2 = jnp.maximum(a2[:, :L2], a2[:, L2:])                    # (BB*H4, W2*C2)
    u2 = jnp.maximum(h2[:, :LU2], h2[:, C2:])                   # (BB*H4, (W2-1)*C2)
    emb = jnp.dot(u2, s2_ref[...], preferred_element_type=f32)  # (BB*H4, W4*C2)

    emb_ref[...] = emb.reshape(BB, H4, W4 * C2)                 # lane-dense embedding

    # ---- fc1 + softmax; logits and softmax packed into one lane-denser store.
    c = emb.reshape(BB, H4 * W4 * C2)
    logits = jnp.dot(c.astype(cdt), fcw_ref[...],
                     preferred_element_type=f32) + fcb_ref[...]
    m = jnp.max(logits, axis=-1, keepdims=True)
    e = jnp.exp(logits - m)
    s = jnp.sum(e, axis=-1, keepdims=True)
    sm = e * pl.reciprocal(s, approx=False)
    ls_ref[...] = jnp.concatenate([logits, sm], axis=-1)        # (BB, 2*NC)


# ----------------------------------------------------------------------------
# One-time parameter preparation (all layout work hoisted out of the forward).
# ----------------------------------------------------------------------------
def prepare_params(conv1_w, conv1_b, conv2_w, conv2_b, fc_w, fc_b, H, W,
                   compute_dtype=jnp.bfloat16):
    """conv*_w: PyTorch (Cout, Cin, 3, 3); fc_w: PyTorch (NC, 32*(H//4)*(W//4))."""
    C1, C0 = conv1_w.shape[0], conv1_w.shape[1]
    C2 = conv2_w.shape[0]
    NC = fc_w.shape[0]
    H4, W2, W4 = H // 4, W // 2, W // 4
    f32 = jnp.float32

    w1t = jnp.transpose(conv1_w, (2, 3, 1, 0))   # (3, 3, C0, C1) = [kh, kw, ci, co]
    w2t = jnp.transpose(conv2_w, (2, 3, 1, 0))   # (3, 3, C1, C2)
    kw = jnp.arange(3)[:, None, None]

    # Banded conv1 weight over *unpadded* input lanes:
    #   wb1[kh, wx*C0+ci, w*C1+co] = conv1_w[co, ci, kh, wx-w+1]  (0 elsewhere);
    # out-of-range taps (the zero W-padding) are simply absent.
    wx = jnp.arange(W)[None, :, None]
    wo = jnp.arange(W)[None, None, :]
    ind1 = (wx == wo + kw - 1).astype(f32)                            # (3, W, W)
    wb1 = jnp.einsum('kxw,hkio->hxiwo', ind1, w1t).reshape(3, W * C0, W * C1)

    # Banded conv2 weight over the *uncompacted* W-pre-maxed layer-1 lanes: pooled
    # column m lives at lane block 2*m of u1 (odd blocks -> zero rows), and the
    # zero W-padding taps are dropped.  This folds the layer-1 W-pool compaction
    # and conv2's W padding into one weight matrix.
    m = jnp.arange(W2)[None, :, None]
    w2o = jnp.arange(W2)[None, None, :]
    ind2 = (m == w2o + kw - 1).astype(f32)                            # (3, W2, W2)
    wc2_m = jnp.einsum('kmw,hkio->hmiwo', ind2, w2t)                  # (3, W2, C1, W2, C2)
    wc2 = jnp.zeros((3, W, C1, W2, C2), f32).at[:, 0::2].set(wc2_m)
    wc2 = wc2.reshape(3, W * C1, W2 * C2)[:, :(W - 1) * C1, :]

    # Layer-2 W-pool compaction: emb[:, j*C2+c] = u2[:, (2j)*C2+c]  (exact selection).
    sel = (jnp.arange(W2)[:, None] == 2 * jnp.arange(W4)[None, :]).astype(f32)
    s2 = jnp.kron(sel, jnp.eye(C2, dtype=f32))[:(W2 - 1) * C2, :]

    # fc1 rows permuted from PyTorch (c, h, w) flatten order to NHWC (h, w, c).
    fcw = jnp.transpose(fc_w.reshape(NC, C2, H4, W4),
                        (2, 3, 1, 0)).reshape(H4 * W4 * C2, NC)

    return {
        "wb1": wb1.astype(compute_dtype),
        "b1": jnp.tile(conv1_b, W).reshape(1, W * C1).astype(f32),
        "wc2": wc2.astype(compute_dtype),
        "b2": jnp.tile(conv2_b, W2).reshape(1, W2 * C2).astype(f32),
        "s2": s2,                                   # f32: exact 0/1 selection
        "fc_w": fcw.astype(compute_dtype),
        "fc_b": fc_b.reshape(1, NC).astype(f32),
    }


def _pick_batch_block(B, max_bb=32):
    """Whole batch while small; otherwise a multiple-of-8 divisor so the grid pipelines
    and the 'parallel' axis can split across v7x's two TensorCores."""
    if B <= max_bb:
        return B
    bb = (max_bb // 8) * 8
    while bb >= 8 and B % bb:
        bb -= 8
    return bb if (bb >= 8 and B % bb == 0) else B


# ----------------------------------------------------------------------------
# Forward pass (mirrors simpleCNN.forward) — one pallas_call.
# ----------------------------------------------------------------------------
def simple_cnn_forward(x_nchw, params):
    B, C0, H, W = x_nchw.shape
    H2, H4, W2, W4 = H // 2, H // 4, W // 2, W // 4
    C1 = params["b1"].shape[-1] // W
    C2 = params["b2"].shape[-1] // W2
    NC = params["fc_b"].shape[-1]
    cdt = params["wb1"].dtype

    # Lane-dense input slab: NCHW -> NHWC -> (B, H, W*C0); width+channels share lanes.
    x = jnp.transpose(x_nchw, (0, 2, 3, 1)).reshape(B, H, W * C0)

    BB = _pick_batch_block(B)
    grid = (B // BB,)

    kernel = functools.partial(_fused_cnn_kernel, C0=C0, C1=C1, C2=C2, cdt=cdt)

    emb_flat, ls = pl.pallas_call(
        kernel,
        out_shape=(
            jax.ShapeDtypeStruct((B, H4, W4 * C2), jnp.float32),   # lane-dense embedding
            jax.ShapeDtypeStruct((B, 2 * NC), jnp.float32),        # [logits | softmax]
        ),
        grid=grid,
        in_specs=[
            pl.BlockSpec((BB, H, W * C0), lambda i: (i, 0, 0)),
            pl.BlockSpec((3, W * C0, W * C1), lambda i: (0, 0, 0)),
            pl.BlockSpec((1, W * C1), lambda i: (0, 0)),
            pl.BlockSpec((3, (W - 1) * C1, W2 * C2), lambda i: (0, 0, 0)),
            pl.BlockSpec((1, W2 * C2), lambda i: (0, 0)),
            pl.BlockSpec(((W2 - 1) * C2, W4 * C2), lambda i: (0, 0)),
            pl.BlockSpec((H4 * W4 * C2, NC), lambda i: (0, 0)),
            pl.BlockSpec((1, NC), lambda i: (0, 0)),
        ],
        out_specs=(
            pl.BlockSpec((BB, H4, W4 * C2), lambda i: (i, 0, 0)),
            pl.BlockSpec((BB, 2 * NC), lambda i: (i, 0)),
        ),
        scratch_shapes=[
            pltpu.VMEM((BB, H + 2, W * C0), jnp.float32),          # H-padded conv1 input
            pltpu.VMEM((BB, H2 + 2, (W - 1) * C1), jnp.float32),   # H-padded pooled layer-1
        ],
        compiler_params=pltpu.CompilerParams(
            dimension_semantics=("parallel",)),
    )(x, params["wb1"], params["b1"], params["wc2"], params["b2"],
      params["s2"], params["fc_w"], params["fc_b"])

    logits = ls[:, :NC]
    softmax = ls[:, NC:]
    embedding = jnp.transpose(emb_flat.reshape(B, H4, W4, C2), (0, 3, 1, 2))
    return softmax, embedding, logits


# ----------------------------------------------------------------------------
# Pure-JAX reference (numerical self-check of the PyTorch forward).
# ----------------------------------------------------------------------------
def reference_forward(x, conv1_w, conv1_b, conv2_w, conv2_b, fc_w, fc_b):
    def conv(h, w, b):
        y = jax.lax.conv_general_dilated(
            h, w, (1, 1), ((1, 1), (1, 1)),
            dimension_numbers=("NCHW", "OIHW", "NCHW"))
        return y + b.reshape(1, -1, 1, 1)

    def pool(h):
        return jax.lax.reduce_window(h, -jnp.inf, jax.lax.max,
                                     (1, 1, 2, 2), (1, 1, 2, 2), "VALID")

    h = pool(jax.nn.relu(conv(x, conv1_w, conv1_b)))
    emb = pool(jax.nn.relu(conv(h, conv2_w, conv2_b)))
    c = emb.reshape(emb.shape[0], -1)
    logits = c @ fc_w.T + fc_b
    return jax.nn.softmax(logits, axis=1), emb, logits


if __name__ == "__main__":
    # Small shapes consistent with the module: batch=2, input_dim=(3,16,16), 8 classes.
    B, C0, H, W = 2, 3, 16, 16
    num_classes = 8
    in_features = 32 * (H // 4) * (W // 4)      # 512

    key = jax.random.PRNGKey(0)
    k_x, k_w1, k_b1, k_w2, k_b2, k_fw, k_fb = jax.random.split(key, 7)

    x = jax.random.normal(k_x, (B, C0, H, W), jnp.float32)
    conv1_w = jax.random.normal(k_w1, (16, C0, 3, 3), jnp.float32) * 0.1
    conv1_b = jax.random.normal(k_b1, (16,), jnp.float32) * 0.1
    conv2_w = jax.random.normal(k_w2, (32, 16, 3, 3), jnp.float32) * 0.1
    conv2_b = jax.random.normal(k_b2, (32,), jnp.float32) * 0.1
    fc_w = jax.random.normal(k_fw, (num_classes, in_features), jnp.float32) * 0.05
    fc_b = jax.random.normal(k_fb, (num_classes,), jnp.float32) * 0.1

    ref_sm, ref_emb, ref_logits = reference_forward(
        x, conv1_w, conv1_b, conv2_w, conv2_b, fc_w, fc_b)

    fwd = jax.jit(simple_cnn_forward)

    # ---- f32 MXU inputs: exact-parity check against the pure-JAX reference. ----
    params_f32 = prepare_params(conv1_w, conv1_b, conv2_w, conv2_b, fc_w, fc_b,
                                H, W, compute_dtype=jnp.float32)
    sm32, emb32, lg32 = jax.block_until_ready(fwd(x, params_f32))
    assert sm32.shape == (B, num_classes) and lg32.shape == (B, num_classes)
    assert emb32.shape == (B, 32, H // 4, W // 4)
    assert bool(jnp.allclose(jnp.sum(sm32, axis=1), 1.0, atol=1e-5))
    assert bool(jnp.allclose(lg32, ref_logits, rtol=1e-3, atol=1e-3))
    assert bool(jnp.allclose(emb32, ref_emb, rtol=1e-3, atol=1e-3))
    assert bool(jnp.allclose(sm32, ref_sm, rtol=1e-3, atol=1e-3))

    # ---- bf16 MXU inputs (default per perf review); f32 accumulation; looser tol. ----
    params_bf16 = prepare_params(conv1_w, conv1_b, conv2_w, conv2_b, fc_w, fc_b,
                                 H, W, compute_dtype=jnp.bfloat16)
    sm16, emb16, lg16 = jax.block_until_ready(fwd(x, params_bf16))
    assert bool(jnp.allclose(jnp.sum(sm16, axis=1), 1.0, atol=1e-4))
    assert bool(jnp.allclose(lg16, ref_logits, rtol=3e-2, atol=3e-2))
    assert bool(jnp.allclose(emb16, ref_emb, rtol=3e-2, atol=3e-2))
    assert bool(jnp.allclose(sm16, ref_sm, rtol=3e-2, atol=3e-2))

    print("KERNEL_OK")
</pallas_src>

<mosaic_0001>
module attributes {stable_mosaic.version = 11 : i64} {
  func.func @_fused_cnn_kernel(%arg0: i32, %arg1: memref<2x16x48xf32, #tpu.memory_space<vmem>>, %arg2: memref<3x48x256xf32, #tpu.memory_space<vmem>>, %arg3: memref<1x256xf32, #tpu.memory_space<vmem>>, %arg4: memref<3x240x256xf32, #tpu.memory_space<vmem>>, %arg5: memref<1x256xf32, #tpu.memory_space<vmem>>, %arg6: memref<224x128xf32, #tpu.memory_space<vmem>>, %arg7: memref<512x8xf32, #tpu.memory_space<vmem>>, %arg8: memref<1x8xf32, #tpu.memory_space<vmem>>, %arg9: memref<2x4x128xf32, #tpu.memory_space<vmem>>, %arg10: memref<2x16xf32, #tpu.memory_space<vmem>>, %arg11: memref<2x18x48xf32, #tpu.memory_space<vmem>>, %arg12: memref<2x10x240xf32, #tpu.memory_space<vmem>>) attributes {dimension_semantics = [#tpu.dimension_semantics<parallel>], iteration_bounds = array<i64: 1>, scalar_prefetch = 0 : i64, scratch_operands = 2 : i64, tpu.core_type = #tpu.core_type<tc>, window_params = [{transform_indices = @transform_0, window_bounds = array<i64: 2, 16, 48>}, {pipeline_mode = #tpu.pipeline_mode<synchronous>, transform_indices = @transform_1, window_bounds = array<i64: 3, 48, 256>}, {pipeline_mode = #tpu.pipeline_mode<synchronous>, transform_indices = @transform_2, window_bounds = array<i64: 1, 256>}, {pipeline_mode = #tpu.pipeline_mode<synchronous>, transform_indices = @transform_3, window_bounds = array<i64: 3, 240, 256>}, {pipeline_mode = #tpu.pipeline_mode<synchronous>, transform_indices = @transform_4, window_bounds = array<i64: 1, 256>}, {pipeline_mode = #tpu.pipeline_mode<synchronous>, transform_indices = @transform_5, window_bounds = array<i64: 224, 128>}, {pipeline_mode = #tpu.pipeline_mode<synchronous>, transform_indices = @transform_6, window_bounds = array<i64: 512, 8>}, {pipeline_mode = #tpu.pipeline_mode<synchronous>, transform_indices = @transform_7, window_bounds = array<i64: 1, 8>}, {transform_indices = @transform_8, window_bounds = array<i64: 2, 4, 128>}, {transform_indices = @transform_9, window_bounds = array<i64: 2, 16>}]} {
    %c0 = arith.constant 0 : index
    %c0_0 = arith.constant 0 : index
    %c0_1 = arith.constant 0 : index
    %0 = vector.load %arg1[%c0, %c0_0, %c0_1] : memref<2x16x48xf32, #tpu.memory_space<vmem>>, vector<2x16x48xf32>
    %c0_2 = arith.constant 0 : index
    %c1 = arith.constant 1 : index
    %c0_3 = arith.constant 0 : index
    %1 = vector.load %arg11[%c0_2, %c1, %c0_3] : memref<2x18x48xf32, #tpu.memory_space<vmem>>, vector<2x16x48xf32>
    tpu.vector_store %arg11[%c0_2, %c1, %c0_3], %0 {strides = array<i32>} : memref<2x18x48xf32, #tpu.memory_space<vmem>>, vector<2x16x48xf32>,
    %cst = arith.constant 0.000000e+00 : f32
    %2 = vector.broadcast %cst : f32 to vector<2x1x48xf32>
    %c0_4 = arith.constant 0 : index
    %c0_5 = arith.constant 0 : index
    %c0_6 = arith.constant 0 : index
    %3 = vector.load %arg11[%c0_4, %c0_5, %c0_6] : memref<2x18x48xf32, #tpu.memory_space<vmem>>, vector<2x1x48xf32>
    tpu.vector_store %arg11[%c0_4, %c0_5, %c0_6], %2 {strides = array<i32>} : memref<2x18x48xf32, #tpu.memory_space<vmem>>, vector<2x1x48xf32>,
    %cst_7 = arith.constant 0.000000e+00 : f32
    %4 = vector.broadcast %cst_7 : f32 to vector<2x1x48xf32>
    %c0_8 = arith.constant 0 : index
    %c17 = arith.constant 17 : index
    %c0_9 = arith.constant 0 : index
    %5 = vector.load %arg11[%c0_8, %c17, %c0_9] : memref<2x18x48xf32, #tpu.memory_space<vmem>>, vector<2x1x48xf32>
    tpu.vector_store %arg11[%c0_8, %c17, %c0_9], %4 {strides = array<i32>} : memref<2x18x48xf32, #tpu.memory_space<vmem>>, vector<2x1x48xf32>,
    %cst_10 = arith.constant 0.000000e+00 : f32
    %6 = vector.broadcast %cst_10 : f32 to vector<32x256xf32>
    %c0_11 = arith.constant 0 : index
    %c0_12 = arith.constant 0 : index
    %c0_13 = arith.constant 0 : index
    %7 = vector.load %arg11[%c0_11, %c0_12, %c0_13] : memref<2x18x48xf32, #tpu.memory_space<vmem>>, vector<2x16x48xf32>
    %8 = vector.shape_cast %7 : vector<2x16x48xf32> to vector<32x48xf32>
    %c0_14 = arith.constant 0 : index
    %c0_15 = arith.constant 0 : index
    %c0_16 = arith.constant 0 : index
    %9 = vector.load %arg2[%c0_14, %c0_15, %c0_16] : memref<3x48x256xf32, #tpu.memory_space<vmem>>, vector<1x48x256xf32>
    %10 = vector.shape_cast %9 : vector<1x48x256xf32> to vector<48x256xf32>
    %cst_17 = arith.constant dense<0.000000e+00> : vector<32x256xf32>
    %11 = tpu.matmul %8, %10, %cst_17 {dimension_numbers = #tpu.dot_dimension_numbers<[1], [0], [0], [1], [0, 0, 1, 1], [], []>} : vector<32x48xf32>, vector<48x256xf32>, vector<32x256xf32> -> vector<32x256xf32>
    %12 = arith.addf %6, %11 : vector<32x256xf32>
    %c0_18 = arith.constant 0 : index
    %c1_19 = arith.constant 1 : index
    %c0_20 = arith.constant 0 : index
    %13 = vector.load %arg11[%c0_18, %c1_19, %c0_20] : memref<2x18x48xf32, #tpu.memory_space<vmem>>, vector<2x16x48xf32>
    %14 = vector.shape_cast %13 : vector<2x16x48xf32> to vector<32x48xf32>
    %c1_21 = arith.constant 1 : index
    %c0_22 = arith.constant 0 : index
    %c0_23 = arith.constant 0 : index
    %15 = vector.load %arg2[%c1_21, %c0_22, %c0_23] : memref<3x48x256xf32, #tpu.memory_space<vmem>>, vector<1x48x256xf32>
    %16 = vector.shape_cast %15 : vector<1x48x256xf32> to vector<48x256xf32>
    %cst_24 = arith.constant dense<0.000000e+00> : vector<32x256xf32>
    %17 = tpu.matmul %14, %16, %cst_24 {dimension_numbers = #tpu.dot_dimension_numbers<[1], [0], [0], [1], [0, 0, 1, 1], [], []>} : vector<32x48xf32>, vector<48x256xf32>, vector<32x256xf32> -> vector<32x256xf32>
    %18 = arith.addf %12, %17 : vector<32x256xf32>
    %c0_25 = arith.constant 0 : index
    %c2 = arith.constant 2 : index
    %c0_26 = arith.constant 0 : index
    %19 = vector.load %arg11[%c0_25, %c2, %c0_26] : memref<2x18x48xf32, #tpu.memory_space<vmem>>, vector<2x16x48xf32>
    %20 = vector.shape_cast %19 : vector<2x16x48xf32> to vector<32x48xf32>
    %c2_27 = arith.constant 2 : index
    %c0_28 = arith.constant 0 : index
    %c0_29 = arith.constant 0 : index
    %21 = vector.load %arg2[%c2_27, %c0_28, %c0_29] : memref<3x48x256xf32, #tpu.memory_space<vmem>>, vector<1x48x256xf32>
    %22 = vector.shape_cast %21 : vector<1x48x256xf32> to vector<48x256xf32>
    %cst_30 = arith.constant dense<0.000000e+00> : vector<32x256xf32>
    %23 = tpu.matmul %20, %22, %cst_30 {dimension_numbers = #tpu.dot_dimension_numbers<[1], [0], [0], [1], [0, 0, 1, 1], [], []>} : vector<32x48xf32>, vector<48x256xf32>, vector<32x256xf32> -> vector<32x256xf32>
    %24 = arith.addf %18, %23 : vector<32x256xf32>
    %c0_31 = arith.constant 0 : index
    %c0_32 = arith.constant 0 : index
    %25 = vector.load %arg3[%c0_31, %c0_32] : memref<1x256xf32, #tpu.memory_space<vmem>>, vector<1x256xf32>
    %26 = vector.broadcast %25 : vector<1x256xf32> to vector<32x256xf32>
    %27 = arith.addf %24, %26 : vector<32x256xf32>
    %cst_33 = arith.constant 0.000000e+00 : f32
    %28 = vector.broadcast %cst_33 : f32 to vector<32x256xf32>
    %29 = arith.maximumf %27, %28 : vector<32x256xf32>
    %30 = vector.shape_cast %29 : vector<32x256xf32> to vector<16x512xf32>
    %31 = vector.extract_strided_slice %30 {offsets = [0, 0], sizes = [16, 256], strides = [1, 1]} : vector<16x512xf32> to vector<16x256xf32>
    %32 = vector.extract_strided_slice %30 {offsets = [0, 256], sizes = [16, 256], strides = [1, 1]} : vector<16x512xf32> to vector<16x256xf32>
    %33 = arith.maximumf %31, %32 : vector<16x256xf32>
    %34 = vector.extract_strided_slice %33 {offsets = [0, 0], sizes = [16, 240], strides = [1, 1]} : vector<16x256xf32> to vector<16x240xf32>
    %35 = vector.extract_strided_slice %33 {offsets = [0, 16], sizes = [16, 240], strides = [1, 1]} : vector<16x256xf32> to vector<16x240xf32>
    %36 = arith.maximumf %34, %35 : vector<16x240xf32>
    %37 = vector.shape_cast %36 : vector<16x240xf32> to vector<2x8x240xf32>
    %c0_34 = arith.constant 0 : index
    %c1_35 = arith.constant 1 : index
    %c0_36 = arith.constant 0 : index
    %38 = vector.load %arg12[%c0_34, %c1_35, %c0_36] : memref<2x10x240xf32, #tpu.memory_space<vmem>>, vector<2x8x240xf32>
    tpu.vector_store %arg12[%c0_34, %c1_35, %c0_36], %37 {strides = array<i32>} : memref<2x10x240xf32, #tpu.memory_space<vmem>>, vector<2x8x240xf32>,
    %cst_37 = arith.constant 0.000000e+00 : f32
    %39 = vector.broadcast %cst_37 : f32 to vector<2x1x240xf32>
    %c0_38 = arith.constant 0 : index
    %c0_39 = arith.constant 0 : index
    %c0_40 = arith.constant 0 : index
    %40 = vector.load %arg12[%c0_38, %c0_39, %c0_40] : memref<2x10x240xf32, #tpu.memory_space<vmem>>, vector<2x1x240xf32>
    tpu.vector_store %arg12[%c0_38, %c0_39, %c0_40], %39 {strides = array<i32>} : memref<2x10x240xf32, #tpu.memory_space<vmem>>, vector<2x1x240xf32>,
    %cst_41 = arith.constant 0.000000e+00 : f32
    %41 = vector.broadcast %cst_41 : f32 to vector<2x1x240xf32>
    %c0_42 = arith.constant 0 : index
    %c9 = arith.constant 9 : index
    %c0_43 = arith.constant 0 : index
    %42 = vector.load %arg12[%c0_42, %c9, %c0_43] : memref<2x10x240xf32, #tpu.memory_space<vmem>>, vector<2x1x240xf32>
    tpu.vector_store %arg12[%c0_42, %c9, %c0_43], %41 {strides = array<i32>} : memref<2x10x240xf32, #tpu.memory_space<vmem>>, vector<2x1x240xf32>,
    %cst_44 = arith.constant 0.000000e+00 : f32
    %43 = vector.broadcast %cst_44 : f32 to vector<16x256xf32>
    %c0_45 = arith.constant 0 : index
    %c0_46 = arith.constant 0 : index
    %c0_47 = arith.constant 0 : index
    %44 = vector.load %arg12[%c0_45, %c0_46, %c0_47] : memref<2x10x240xf32, #tpu.memory_space<vmem>>, vector<2x8x240xf32>
    %45 = vector.shape_cast %44 : vector<2x8x240xf32> to vector<16x240xf32>
    %c0_48 = arith.constant 0 : index
    %c0_49 = arith.constant 0 : index
    %c0_50 = arith.constant 0 : index
    %46 = vector.load %arg4[%c0_48, %c0_49, %c0_50] : memref<3x240x256xf32, #tpu.memory_space<vmem>>, vector<1x240x256xf32>
    %47 = vector.shape_cast %46 : vector<1x240x256xf32> to vector<240x256xf32>
    %cst_51 = arith.constant dense<0.000000e+00> : vector<16x256xf32>
    %48 = tpu.matmul %45, %47, %cst_51 {dimension_numbers = #tpu.dot_dimension_numbers<[1], [0], [0], [1], [0, 0, 1, 1], [], []>} : vector<16x240xf32>, vector<240x256xf32>, vector<16x256xf32> -> vector<16x256xf32>
    %49 = arith.addf %43, %48 : vector<16x256xf32>
    %c0_52 = arith.constant 0 : index
    %c1_53 = arith.constant 1 : index
    %c0_54 = arith.constant 0 : index
    %50 = vector.load %arg12[%c0_52, %c1_53, %c0_54] : memref<2x10x240xf32, #tpu.memory_space<vmem>>, vector<2x8x240xf32>
    %51 = vector.shape_cast %50 : vector<2x8x240xf32> to vector<16x240xf32>
    %c1_55 = arith.constant 1 : index
    %c0_56 = arith.constant 0 : index
    %c0_57 = arith.constant 0 : index
    %52 = vector.load %arg4[%c1_55, %c0_56, %c0_57] : memref<3x240x256xf32, #tpu.memory_space<vmem>>, vector<1x240x256xf32>
    %53 = vector.shape_cast %52 : vector<1x240x256xf32> to vector<240x256xf32>
    %cst_58 = arith.constant dense<0.000000e+00> : vector<16x256xf32>
    %54 = tpu.matmul %51, %53, %cst_58 {dimension_numbers = #tpu.dot_dimension_numbers<[1], [0], [0], [1], [0, 0, 1, 1], [], []>} : vector<16x240xf32>, vector<240x256xf32>, vector<16x256xf32> -> vector<16x256xf32>
    %55 = arith.addf %49, %54 : vector<16x256xf32>
    %c0_59 = arith.constant 0 : index
    %c2_60 = arith.constant 2 : index
    %c0_61 = arith.constant 0 : index
    %56 = vector.load %arg12[%c0_59, %c2_60, %c0_61] : memref<2x10x240xf32, #tpu.memory_space<vmem>>, vector<2x8x240xf32>
    %57 = vector.shape_cast %56 : vector<2x8x240xf32> to vector<16x240xf32>
    %c2_62 = arith.constant 2 : index
    %c0_63 = arith.constant 0 : index
    %c0_64 = arith.constant 0 : index
    %58 = vector.load %arg4[%c2_62, %c0_63, %c0_64] : memref<3x240x256xf32, #tpu.memory_space<vmem>>, vector<1x240x256xf32>
    %59 = vector.shape_cast %58 : vector<1x240x256xf32> to vector<240x256xf32>
    %cst_65 = arith.constant dense<0.000000e+00> : vector<16x256xf32>
    %60 = tpu.matmul %57, %59, %cst_65 {dimension_numbers = #tpu.dot_dimension_numbers<[1], [0], [0], [1], [0, 0, 1, 1], [], []>} : vector<16x240xf32>, vector<240x256xf32>, vector<16x256xf32> -> vector<16x256xf32>
    %61 = arith.addf %55, %60 : vector<16x256xf32>
    %c0_66 = arith.constant 0 : index
    %c0_67 = arith.constant 0 : index
    %62 = vector.load %arg5[%c0_66, %c0_67] : memref<1x256xf32, #tpu.memory_space<vmem>>, vector<1x256xf32>
    %63 = vector.broadcast %62 : vector<1x256xf32> to vector<16x256xf32>
    %64 = arith.addf %61, %63 : vector<16x256xf32>
    %cst_68 = arith.constant 0.000000e+00 : f32
    %65 = vector.broadcast %cst_68 : f32 to vector<16x256xf32>
    %66 = arith.maximumf %64, %65 : vector<16x256xf32>
    %67 = vector.shape_cast %66 : vector<16x256xf32> to vector<8x512xf32>
    %68 = vector.extract_strided_slice %67 {offsets = [0, 0], sizes = [8, 256], strides = [1, 1]} : vector<8x512xf32> to vector<8x256xf32>
    %69 = vector.extract_strided_slice %67 {offsets = [0, 256], sizes = [8, 256], strides = [1, 1]} : vector<8x512xf32> to vector<8x256xf32>
    %70 = arith.maximumf %68, %69 : vector<8x256xf32>
    %71 = vector.extract_strided_slice %70 {offsets = [0, 0], sizes = [8, 224], strides = [1, 1]} : vector<8x256xf32> to vector<8x224xf32>
    %72 = vector.extract_strided_slice %70 {offsets = [0, 32], sizes = [8, 224], strides = [1, 1]} : vector<8x256xf32> to vector<8x224xf32>
    %73 = arith.maximumf %71, %72 : vector<8x224xf32>
    %c0_69 = arith.constant 0 : index
    %c0_70 = arith.constant 0 : index
    %74 = vector.load %arg6[%c0_69, %c0_70] : memref<224x128xf32, #tpu.memory_space<vmem>>, vector<224x128xf32>
    %cst_71 = arith.constant dense<0.000000e+00> : vector<8x128xf32>
    %75 = tpu.matmul %73, %74, %cst_71 {dimension_numbers = #tpu.dot_dimension_numbers<[1], [0], [0], [1], [0, 0, 1, 1], [], []>} : vector<8x224xf32>, vector<224x128xf32>, vector<8x128xf32> -> vector<8x128xf32>
    %76 = vector.shape_cast %75 : vector<8x128xf32> to vector<2x4x128xf32>
    %c0_72 = arith.constant 0 : index
    %c0_73 = arith.constant 0 : index
    %c0_74 = arith.constant 0 : index
    %77 = vector.load %arg9[%c0_72, %c0_73, %c0_74] : memref<2x4x128xf32, #tpu.memory_space<vmem>>, vector<2x4x128xf32>
    tpu.vector_store %arg9[%c0_72, %c0_73, %c0_74], %76 {strides = array<i32>} : memref<2x4x128xf32, #tpu.memory_space<vmem>>, vector<2x4x128xf32>,
    %78 = vector.shape_cast %75 : vector<8x128xf32> to vector<2x512xf32>
    %c0_75 = arith.constant 0 : index
    %c0_76 = arith.constant 0 : index
    %79 = vector.load %arg7[%c0_75, %c0_76] : memref<512x8xf32, #tpu.memory_space<vmem>>, vector<512x8xf32>
    %cst_77 = arith.constant dense<0.000000e+00> : vector<2x8xf32>
    %80 = tpu.matmul %78, %79, %cst_77 {dimension_numbers = #tpu.dot_dimension_numbers<[1], [0], [0], [1], [0, 0, 1, 1], [], []>} : vector<2x512xf32>, vector<512x8xf32>, vector<2x8xf32> -> vector<2x8xf32>
    %c0_78 = arith.constant 0 : index
    %c0_79 = arith.constant 0 : index
    %81 = vector.load %arg8[%c0_78, %c0_79] : memref<1x8xf32, #tpu.memory_space<vmem>>, vector<1x8xf32>
    %82 = vector.broadcast %81 : vector<1x8xf32> to vector<2x8xf32>
    %83 = arith.addf %80, %82 : vector<2x8xf32>
    %cst_80 = arith.constant dense<0xFF800000> : vector<2xf32>
    %84 = vector.multi_reduction <maximumf>, %83, %cst_80 [1] : vector<2x8xf32> to vector<2xf32>
    %85 = vector.shape_cast %84 : vector<2xf32> to vector<2x1xf32>
    %86 = vector.broadcast %85 : vector<2x1xf32> to vector<2x8xf32>
    %87 = arith.subf %83, %86 : vector<2x8xf32>
    %88 = math.exp %87 : vector<2x8xf32>
    %cst_81 = arith.constant dense<0.000000e+00> : vector<2xf32>
    %89 = vector.multi_reduction <add>, %88, %cst_81 [1] : vector<2x8xf32> to vector<2xf32>
    %90 = vector.shape_cast %89 : vector<2xf32> to vector<2x1xf32>
    %91 = tpu.reciprocal %90 : vector<2x1xf32> -> vector<2x1xf32>
    %92 = vector.broadcast %91 : vector<2x1xf32> to vector<2x8xf32>
    %93 = arith.mulf %88, %92 : vector<2x8xf32>
    %94 = tpu.concatenate %83, %93 in 1 : vector<2x8xf32>, vector<2x8xf32> -> vector<2x16xf32>
    %c0_82 = arith.constant 0 : index
    %c0_83 = arith.constant 0 : index
    %95 = vector.load %arg10[%c0_82, %c0_83] : memref<2x16xf32, #tpu.memory_space<vmem>>, vector<2x16xf32>
    tpu.vector_store %arg10[%c0_82, %c0_83], %94 {strides = array<i32>} : memref<2x16xf32, #tpu.memory_space<vmem>>, vector<2x16xf32>,
    return
  }
  func.func @transform_0(%arg0: i32) -> (i32, i32, i32) {
    %c0_i32 = arith.constant 0 : i32
    %c0_i32_0 = arith.constant 0 : i32
    %c0_i32_1 = arith.constant 0 : i32
    return %arg0, %c0_i32, %c0_i32_0 : i32, i32, i32
  }
  func.func @transform_1(%arg0: i32) -> (i32, i32, i32) {
    %c0_i32 = arith.constant 0 : i32
    %c0_i32_0 = arith.constant 0 : i32
    %c0_i32_1 = arith.constant 0 : i32
    %c0_i32_2 = arith.constant 0 : i32
    return %c0_i32, %c0_i32_0, %c0_i32_1 : i32, i32, i32
  }
  func.func @transform_2(%arg0: i32) -> (i32, i32) {
    %c0_i32 = arith.constant 0 : i32
    %c0_i32_0 = arith.constant 0 : i32
    %c0_i32_1 = arith.constant 0 : i32
    return %c0_i32, %c0_i32_0 : i32, i32
  }
  func.func @transform_3(%arg0: i32) -> (i32, i32, i32) {
    %c0_i32 = arith.constant 0 : i32
    %c0_i32_0 = arith.constant 0 : i32
    %c0_i32_1 = arith.constant 0 : i32
    %c0_i32_2 = arith.constant 0 : i32
    return %c0_i32, %c0_i32_0, %c0_i32_1 : i32, i32, i32
  }
  func.func @transform_4(%arg0: i32) -> (i32, i32) {
    %c0_i32 = arith.constant 0 : i32
    %c0_i32_0 = arith.constant 0 : i32
    %c0_i32_1 = arith.constant 0 : i32
    return %c0_i32, %c0_i32_0 : i32, i32
  }
  func.func @transform_5(%arg0: i32) -> (i32, i32) {
    %c0_i32 = arith.constant 0 : i32
    %c0_i32_0 = arith.constant 0 : i32
    %c0_i32_1 = arith.constant 0 : i32
    return %c0_i32, %c0_i32_0 : i32, i32
  }
  func.func @transform_6(%arg0: i32) -> (i32, i32) {
    %c0_i32 = arith.constant 0 : i32
    %c0_i32_0 = arith.constant 0 : i32
    %c0_i32_1 = arith.constant 0 : i32
    return %c0_i32, %c0_i32_0 : i32, i32
  }
  func.func @transform_7(%arg0: i32) -> (i32, i32) {
    %c0_i32 = arith.constant 0 : i32
    %c0_i32_0 = arith.constant 0 : i32
    %c0_i32_1 = arith.constant 0 : i32
    return %c0_i32, %c0_i32_0 : i32, i32
  }
  func.func @transform_8(%arg0: i32) -> (i32, i32, i32) {
    %c0_i32 = arith.constant 0 : i32
    %c0_i32_0 = arith.constant 0 : i32
    %c0_i32_1 = arith.constant 0 : i32
    return %arg0, %c0_i32, %c0_i32_0 : i32, i32, i32
  }
  func.func @transform_9(%arg0: i32) -> (i32, i32) {
    %c0_i32 = arith.constant 0 : i32
    %c0_i32_0 = arith.constant 0 : i32
    return %arg0, %c0_i32 : i32, i32
  }
}

</mosaic_0001>

<bundles_post_ra>
// kernel: simple_cnn_forward.1
= control target key start
LH: loop header
LB: loop body
LE: loop exit
PB: predicated region body
PF: predicated region fallthrough
CT: control target
= control target key end

     0   :  { %15 = vsyncpa [#allocation5], 0  ;;  %s2192_s30 = smov [#allocation4]   ;;  %s2845_s0 = inlined_call_operand.vmem [shape: f32[2,16,48], index: 0, kind: input, shape index: {}]   ;;  %s2846_s1 = inlined_call_operand.vmem [shape: f32[3,48,256], index: 1, kind: input, shape index: {}]   ;;  %s2847_s2 = inlined_call_operand.vmem [shape: f32[1,256], index: 2, kind: input, shape index: {}]   ;;  %s2848_s3 = inlined_call_operand.hbm [shape: f32[3,240,256], index: 3, kind: input, shape index: {}]   ;;  %s2849_s4 = inlined_call_operand.vmem [shape: f32[1,256], index: 4, kind: input, shape index: {}]   ;;  %s2850_s5 = inlined_call_operand.vmem [shape: f32[224,128], index: 5, kind: input, shape index: {}]   ;;  %s2851_s6 = inlined_call_operand.vmem [shape: f32[512,8], index: 6, kind: input, shape index: {}]   ;;  %s2852_s7 = inlined_call_operand.vmem [shape: f32[1,8], index: 7, kind: input, shape index: {}]   ;;  %s2853_s8 = inlined_call_operand.vmem [shape: f32[2,4,128], index: 8, kind: output, shape index: {0}]   ;;  %s2854_s9 = inlined_call_operand.vmem [shape: f32[2,16], index: 9, kind: output, shape index: {1}]  }
   0x1   :  { %s27_s10 = sshll.u32 %s2192_s30, 4  ;;  %s2168_s13 = scalar_lea.hbm %s2848_s3, 23040  ;;  %s28_s10 = int_to_ptr.vmem [resolvable:$true] %s27_s10 }
   0x2   :  { %p2169_p0 = scmp.ne.s32.totalorder %s2848_s3, %s2168_s13  ;;  %p2172_p1 = scmp.lt.u32.totalorder %s2168_s13, %s2848_s3 }
   0x4   :  { %p2174_p2 = pnand %p2172_p1, %p2169_p0 }
   0x6   :  { %2177 = shalt.err (!%p2174_p2)
}
   0x7   :  { %s2178_s18 = scalar_lea.vmem %s28_s10, 23040  ;;  %p2183_p4 = scmp.lt.s32.totalorder %s28_s10, %s28_s10 }
   0x8   :  { %p2179_p3 = scmp.ne.s32.totalorder %s28_s10, %s2178_s18  ;;  %p2184_p5 = scmp.lt.s32.totalorder %s2178_s18, %s2178_s18 }
   0xa   :  { %p2185_p6 = por %p2184_p5, %p2183_p4 }
   0xc   :  { %p2186_p7 = pnand %p2185_p6, %p2179_p3 }
   0xe   :  { %2189 = shalt.err (!%p2186_p7)
}
   0xf   :  { %s2193_s19 = smov 256   ;;  %s2194_s20 = smov 16  }
  0x10   :  { %33 = dma.hbm_to_vmem [thread:$0]  %s2848_s3, 23040, %s28_s10, [#allocation5], %s2193_s19, %s2193_s19, %s2194_s20  }
  0x11   :  { %2190 = dma.done.wait [#allocation5], 23040  }
  0x12   :  { %2191 = vsyncadd [#allocation5], 4294944256  ;;  %vm54_vm0 = vcmask 385024   ;;  %v2195_v0 = vmov 0.0   ;;  %v1694_v1 = vld [vmem:[%s2846_s1 + $0x68] sm:$0xff]  ;;  %v1696_v2 = vld [vmem:[%s2846_s1 + $0x78] sm:$0xff] }
  0x13   :  { %168 = vmatprep.mubr.f32.mxu0 %v2195_v0  ;;  %55 = vst.msk [vmem:[#allocation2] sm:$0x1] %vm54_vm0, %v2195_v0  ;;  %56 = vst.msk [vmem:[#allocation2 + $0x18] sm:$0x1] %vm54_vm0, %v2195_v0  ;;  %v1693_v3 = vld [vmem:[%s2846_s1 + $0x60] sm:$0xff]  ;;  %v1807_v4 = vpack.c.bf16 %v1696_v2, %v1694_v1  ;;  %v1695_v5 = vld [vmem:[%s2846_s1 + $0x70] sm:$0xff] }
  0x14   :  { %57 = vst.msk [vmem:[#allocation2 + $0x11] sm:$0x1] %vm54_vm0, %v2195_v0  ;;  %58 = vst.msk [vmem:[#allocation2 + $0x29] sm:$0x1] %vm54_vm0, %v2195_v0  ;;  %v1698_v6 = vld [vmem:[%s2846_s1 + $0x88] sm:$0xff]  ;;  %v1700_v7 = vld [vmem:[%s2846_s1 + $0x98] sm:$0xff]  ;;  %v1809_v8 = vpack.c.bf16 %v1695_v5, %v1693_v3 }
  0x15   :  { %v1811_v9 = vpack.c.bf16 %v1700_v7, %v1698_v6  ;;  %v1697_v10 = vld [vmem:[%s2846_s1 + $0x80] sm:$0xff]  ;;  %v1699_v11 = vld [vmem:[%s2846_s1 + $0x90] sm:$0xff]  ;;  %v1702_v12 = vld [vmem:[%s2846_s1 + $0xa8] sm:$0xff]  ;;  %vm49_vm1 = vcmask 392192   ;;  %1808 = vmatprep.subr.bf16.mxu0 %v1807_v4  ;;  %vm592_vm3 = vcmask 916480   ;;  %vm670_vm4 = vcmask 916481  }
  0x16   :  { %v1704_v13 = vld [vmem:[%s2846_s1 + $0xb8] sm:$0xff]  ;;  %1810 = vmatpush1.bf16.msra.mxu0 %v1809_v8  ;;  %v1813_v14 = vpack.c.bf16 %v1699_v11, %v1697_v10  ;;  %v45_v15 = vld [vmem:[%s2845_s0] sm:$0xff]  ;;  %v1703_v18 = vld [vmem:[%s2846_s1 + $0xb0] sm:$0xff]  ;;  %v422_v8 = vlaneseq  ;;  %vm673_vm5 = vcmask 909312   ;;  %vm774_vm6 = vcmask 1046528   ;;  %s2200_s21 = smov 96  }
  0x17   :  { %1812 = vmatprep.subr.bf16.mxu0 %v1811_v9  ;;  %v1815_v16 = vpack.c.bf16 %v1704_v13, %v1702_v12  ;;  %v1701_v17 = vld [vmem:[%s2846_s1 + $0xa0] sm:$0xff]  ;;  %50 = vst.msk [vmem:[#allocation2 + $0x1] sm:$0xff] %vm49_vm1, %v45_v15  ;;  %v46_v19 = vld [vmem:[%s2845_s0 + $0x8] sm:$0xff]  ;;  %v66_v21 = vld [vmem:[%s2846_s1 + $0x18] sm:$0xff]  ;;  %vm1030_vm7 = vcmask 1045504   ;;  %vm1283_vm8 = vcmask 785408  }
  0x18   :  { %v64_v20 = vld [vmem:[%s2846_s1 + $0x8] sm:$0xff]  ;;  %51 = vst.msk [vmem:[#allocation2 + $0x9] sm:$0xff] %vm49_vm1, %v46_v19  ;;  %v47_v22 = vld [vmem:[%s2845_s0 + $0x10] sm:$0xff]  ;;  %v1817_v23 = vpack.c.bf16 %v1703_v18, %v1701_v17  ;;  %v48_v24 = vld [vmem:[%s2845_s0 + $0x18] sm:$0xff]  ;;  %vm681_vm2 = vcmp.lt.s32.totalorder %v422_v8, 240  ;;  %vm1664_vm9 = vcmask 58368  }
  0x19   :  { %52 = vst.msk [vmem:[#allocation2 + $0x19] sm:$0xff] %vm49_vm1, %v47_v22  ;;  %v1819_v25 = vpack.c.bf16 %v66_v21, %v64_v20  ;;  %v63_v26 = vld [vmem:[%s2846_s1] sm:$0xff]  ;;  %v65_v27 = vld [vmem:[%s2846_s1 + $0x10] sm:$0xff]  ;;  %53 = vst.msk [vmem:[#allocation2 + $0x21] sm:$0xff] %vm49_vm1, %v48_v24  ;;  %vm1680_vm10 = vcmask 64512   ;;  %vm1682_vm11 = vcmask 123904  }
  0x1a   :  { %1814 = vmatpush1.bf16.msra.mxu0 %v1813_v14  ;;  %v68_v28 = vld [vmem:[%s2846_s1 + $0x28] sm:$0xff]  ;;  %v70_v29 = vld [vmem:[%s2846_s1 + $0x38] sm:$0xff]  ;;  %v1821_v31 = vpack.c.bf16 %v65_v27, %v63_v26  ;;  %v67_v33 = vld [vmem:[%s2846_s1 + $0x20] sm:$0xff]  ;;  %683 = vst.msk [vmem:[#allocation3] ss:$8 sm:$0x3] %vm681_vm2, %v2195_v0 }
  0x1b   :  { %1816 = vmatprep.subr.bf16.mxu0 %v1815_v16  ;;  %v1823_v32 = vpack.c.bf16 %v70_v29, %v68_v28  ;;  %v69_v34 = vld [vmem:[%s2846_s1 + $0x30] sm:$0xff]  ;;  %v72_v35 = vld [vmem:[%s2846_s1 + $0x48] sm:$0xff]  ;;  %v74_v36 = vld [vmem:[%s2846_s1 + $0x58] sm:$0xff]  ;;  %686 = vst.msk [vmem:[#allocation3 + $0x20] ss:$8 sm:$0x3] %vm681_vm2, %v2195_v0 }
  0x1c   :  { %v1825_v38 = vpack.c.bf16 %v69_v34, %v67_v33  ;;  %v1827_v39 = vpack.c.bf16 %v74_v36, %v72_v35  ;;  %v71_v40 = vld [vmem:[%s2846_s1 + $0x40] sm:$0xff]  ;;  %v73_v41 = vld [vmem:[%s2846_s1 + $0x50] sm:$0xff]  ;;  %v1714_v42 = vld [vmem:[%s2846_s1 + $0xc8] sm:$0xff]  ;;  %689 = vst.msk [vmem:[#allocation3 + $0x11] ss:$8 sm:$0x3] %vm681_vm2, %v2195_v0 }
  0x1d   :  { %v1716_v43 = vld [vmem:[%s2846_s1 + $0xd8] sm:$0xff]  ;;  %v1829_v45 = vpack.c.bf16 %v73_v41, %v71_v40  ;;  %v1713_v48 = vld [vmem:[%s2846_s1 + $0xc0] sm:$0xff]  ;;  %v1715_v49 = vld [vmem:[%s2846_s1 + $0xd0] sm:$0xff]  ;;  %692 = vst.msk [vmem:[#allocation3 + $0x31] ss:$8 sm:$0x3] %vm681_vm2, %v2195_v0 }
  0x1e   :  { %1818 = vmatpush1.bf16.msra.mxu0 %v1817_v23  ;;  %v75_v30 = vld [vmem:[#allocation2 + $0x1] sm:$0xff]  ;;  %v1831_v46 = vpack.c.bf16 %v1716_v43, %v1714_v42  ;;  %v1720_v51 = vld [vmem:[%s2846_s1 + $0xf8] sm:$0xff]  ;;  %v1833_v53 = vpack.c.bf16 %v1715_v49, %v1713_v48  ;;  %v1719_v56 = vld [vmem:[%s2846_s1 + $0xf0] sm:$0xff] }
  0x1f   :  { %1820 = vmatprep.subr.bf16.mxu0 %v1819_v25  ;;  %v76_v37 = vld [vmem:[#allocation2 + $0x9] sm:$0xff]  ;;  %v59_v52 = vld [vmem:[#allocation2] sm:$0xff]  ;;  %v1724_v58 = vld [vmem:[%s2846_s1 + $0x118] sm:$0xff] }
  0x20   :  { %v77_v44 = vld [vmem:[#allocation2 + $0x19] sm:$0xff]  ;;  %v78_v47 = vld [vmem:[#allocation2 + $0x21] sm:$0xff]  ;;  %v1723_v63 = vld [vmem:[%s2846_s1 + $0x110] sm:$0xff] }
  0x21   :  { %1705 = vmatmul.mubr.msk.f32.vlgmr.msra.gmra.mrb[0].mxu0 %vm49_vm1, %v75_v30  ;;  %v1718_v50 = vld [vmem:[%s2846_s1 + $0xe8] sm:$0xff]  ;;  %v1717_v55 = vld [vmem:[%s2846_s1 + $0xe0] sm:$0xff]  ;;  %v61_v1 = vld [vmem:[#allocation2 + $0x18] sm:$0xff] }
  0x22   :  { %1822 = vmatpush1.bf16.msra.mxu0 %v1821_v31  ;;  %174 = vmatprep.mubr.f32.mxu0 %v2195_v0  ;;  %v1835_v54 = vpack.c.bf16 %v1720_v51, %v1718_v50  ;;  %v1722_v57 = vld [vmem:[%s2846_s1 + $0x108] sm:$0xff]  ;;  %v1837_v60 = vpack.c.bf16 %v1719_v56, %v1717_v55  ;;  %v1721_v62 = vld [vmem:[%s2846_s1 + $0x100] sm:$0xff]  ;;  %v791_v9 = vld [vmem:[#allocation4 + $0x1e8] sm:$0xff]  ;;  %v2421_v50 = vshrl.u32 %v422_v8, 7 }
  0x23   :  { %1824 = vmatprep.subr.bf16.mxu0 %v1823_v32  ;;  %v60_v59 = vld [vmem:[#allocation2 + $0x8] sm:$0xff]  ;;  %v1839_v61 = vpack.c.bf16 %v1724_v58, %v1722_v57  ;;  %v1841_v2 = vpack.c.bf16 %v1723_v63, %v1721_v62  ;;  %v62_v3 = vld [vmem:[#allocation2 + $0x20] sm:$0xff]  ;;  %v790_v11 = vld [vmem:[#allocation4 + $0x1e0] sm:$0xff] }
  0x24   :  { %v294_v4 = vld [vmem:[#allocation2 + $0x2] sm:$0xff]  ;;  %v295_v5 = vld [vmem:[#allocation2 + $0xa] sm:$0xff]  ;;  %v296_v6 = vld [vmem:[#allocation2 + $0x1a] sm:$0xff]  ;;  %v424_v51 = vsub.s32 0, %v2421_v50 }
  0x25   :  { %1706 = vmatmul.mubr.msk.f32.gmra.mrb[2].mxu0 %vm49_vm1, %v76_v37  ;;  %v297_v7 = vld [vmem:[#allocation2 + $0x22] sm:$0xff]  ;;  %v795_v14 = vld [vmem:[#allocation4 + $0x208] sm:$0xff]  ;;  %v794_v18 = vld [vmem:[#allocation4 + $0x200] sm:$0xff] }
  0x26   :  { %180 = vmatprep.mubr.f32.mxu0 %v2195_v0  ;;  %1826 = vmatpush1.bf16.msra.mxu0 %v1825_v38  ;;  %v793_v10 = vld [vmem:[#allocation4 + $0x1f8] sm:$0xff]  ;;  %v792_v13 = vld [vmem:[#allocation4 + $0x1f0] sm:$0xff]  ;;  %v799_v20 = vld [vmem:[#allocation4 + $0x228] sm:$0xff] }
  0x27   :  { %1828 = vmatprep.subr.bf16.mxu0 %v1827_v39  ;;  %v1843_v12 = vpack.c.bf16 %v793_v10, %v791_v9  ;;  %v797_v15 = vld [vmem:[#allocation4 + $0x218] sm:$0xff]  ;;  %v1845_v16 = vpack.c.bf16 %v792_v13, %v790_v11  ;;  %v796_v19 = vld [vmem:[#allocation4 + $0x210] sm:$0xff]  ;;  %v798_v24 = vld [vmem:[#allocation4 + $0x220] sm:$0xff] }
  0x28   :  { %v1847_v17 = vpack.c.bf16 %v797_v15, %v795_v14  ;;  %v801_v21 = vld [vmem:[#allocation4 + $0x238] sm:$0xff]  ;;  %v1849_v22 = vpack.c.bf16 %v796_v19, %v794_v18  ;;  %v803_v25 = vld [vmem:[#allocation4 + $0x248] sm:$0xff]  ;;  %v802_v29 = vld [vmem:[#allocation4 + $0x240] sm:$0xff] }
  0x29   :  { %1707 = vmatmul.mubr.msk.f32.gmra.mrb[4].mxu0 %vm49_vm1, %v77_v44  ;;  %1844 = vmatprep.subr.bf16.mxu1 %v1843_v12  ;;  %v1851_v23 = vpack.c.bf16 %v801_v21, %v799_v20  ;;  %v805_v26 = vld [vmem:[#allocation4 + $0x258] sm:$0xff]  ;;  %v804_v30 = vld [vmem:[#allocation4 + $0x250] sm:$0xff]  ;;  %v807_v31 = vld [vmem:[#allocation4 + $0x268] sm:$0xff] }
  0x2a   :  { %186 = vmatprep.mubr.f32.mxu0 %v2195_v0  ;;  %1830 = vmatpush1.bf16.msra.mxu0 %v1829_v45  ;;  %v1855_v28 = vpack.c.bf16 %v805_v26, %v803_v25  ;;  %v809_v32 = vld [vmem:[#allocation4 + $0x278] sm:$0xff]  ;;  %v1857_v33 = vpack.c.bf16 %v804_v30, %v802_v29  ;;  %v806_v35 = vld [vmem:[#allocation4 + $0x260] sm:$0xff]  ;;  %v808_v36 = vld [vmem:[#allocation4 + $0x270] sm:$0xff] }
  0x2b   :  { %1832 = vmatprep.subr.bf16.mxu0 %v1831_v46  ;;  %1846 = vmatpush1.bf16.msra.mxu1 %v1845_v16  ;;  %v1859_v34 = vpack.c.bf16 %v809_v32, %v807_v31  ;;  %v811_v37 = vld [vmem:[#allocation4 + $0x288] sm:$0xff]  ;;  %v813_v38 = vld [vmem:[#allocation4 + $0x298] sm:$0xff]  ;;  %v1861_v39 = vpack.c.bf16 %v808_v36, %v806_v35  ;;  %v810_v41 = vld [vmem:[#allocation4 + $0x280] sm:$0xff] }
  0x2c   :  { %1848 = vmatprep.subr.bf16.mxu1 %v1847_v17  ;;  %v1863_v40 = vpack.c.bf16 %v813_v38, %v811_v37  ;;  %v812_v42 = vld [vmem:[#allocation4 + $0x290] sm:$0xff]  ;;  %v815_v43 = vld [vmem:[#allocation4 + $0x2a8] sm:$0xff]  ;;  %v817_v44 = vld [vmem:[#allocation4 + $0x2b8] sm:$0xff] }
  0x2d   :  { %1708 = vmatmul.mubr.msk.f32.gmra.mrb[6].mxu0 %vm49_vm1, %v78_v47  ;;  %v1865_v45 = vpack.c.bf16 %v812_v42, %v810_v41  ;;  %v1867_v46 = vpack.c.bf16 %v817_v44, %v815_v43  ;;  %v814_v47 = vld [vmem:[#allocation4 + $0x2a0] sm:$0xff]  ;;  %v816_v48 = vld [vmem:[#allocation4 + $0x2b0] sm:$0xff]  ;;  %v819_v58 = vld [vmem:[#allocation4 + $0x2c8] sm:$0xff] }
  0x2e   :  { %269 = vmatprep.mubr.f32.mxu0 %v2195_v0  ;;  %v1869_v49 = vpack.c.bf16 %v816_v48, %v814_v47  ;;  %v818_v63 = vld [vmem:[#allocation4 + $0x2c0] sm:$0xff]  ;;  %v825_v8 = vld [vmem:[#allocation4 + $0x2f8] sm:$0xff]  ;;  %v824_v14 = vld [vmem:[#allocation4 + $0x2f0] sm:$0xff] }
  0x2f   :  { %1850 = vmatpush1.bf16.msra.mxu1 %v1849_v22  ;;  %v822_v13 = vld [vmem:[#allocation4 + $0x2e0] sm:$0xff]  ;;  %v827_v22 = vld [vmem:[#allocation4 + $0x308] sm:$0xff]  ;;  %v828_v29 = vld [vmem:[#allocation4 + $0x310] sm:$0xff] }
  0x30   :  { %1852 = vmatprep.subr.bf16.mxu1 %v1851_v23  ;;  %v1877_v17 = vpack.c.bf16 %v824_v14, %v822_v13  ;;  %v829_v23 = vld [vmem:[#allocation4 + $0x318] sm:$0xff]  ;;  %v832_v47 = vld [vmem:[#allocation4 + $0x330] sm:$0xff]  ;;  %v839_v14 = vld [vmem:[#allocation4 + $0x368] sm:$0xff] }
  0x31   :  { %1709 = vmatmul.mubr.msk.f32.vlgmr.msra.gmra.mrb[0].mxu0 %vm49_vm1, %v59_v52  ;;  %v420_v52 = vld [vmem:[%s2847_s2] sm:$0x3]  ;;  %s2197_s2 = smov 112  }
  0x32   :  { %1834 = vmatpush1.bf16.msra.mxu0 %v1833_v53  ;;  %275 = vmatprep.mubr.f32.mxu0 %v2195_v0  ;;  %v428_v53 = vsub.s32 1, %v2421_v50  ;;  %v425_v56 = vrot.slane %v420_v52, %v424_v51 }
  0x33   :  { %1836 = vmatprep.subr.bf16.mxu0 %v1835_v54  ;;  %v2196_v54 = vmov 1966171168  }
  0x34   :  { %v473_v55 = vunpack.c.l.s4 %v2196_v54  ;;  %v2432_v57 = vrot.slane %v420_v52, %v428_v53 }
  0x35   :  { %1710 = vmatmul.mubr.msk.f32.gmra.mrb[2].mxu0 %vm49_vm1, %v60_v59  ;;  %v821_v59 = vld [vmem:[#allocation4 + $0x2d8] sm:$0xff] }
  0x36   :  { %281 = vmatprep.mubr.f32.mxu0 %v2195_v0  ;;  %1838 = vmatpush1.bf16.msra.mxu0 %v1837_v60  ;;  %v1871_v62 = vpack.c.bf16 %v821_v59, %v819_v58 }
  0x37   :  { %1840 = vmatprep.subr.bf16.mxu0 %v1839_v61  ;;  %v474_v61 = vunpack.c.0.s8 %v473_v55 }
  0x39   :  { %1711 = vmatmul.mubr.msk.f32.gmra.mrb[4].mxu0 %vm49_vm1, %v61_v1  ;;  %v820_v1 = vld [vmem:[#allocation4 + $0x2d0] sm:$0xff]  ;;  %v2436_v9 = vsub.s32 %v474_v61, %v2421_v50 }
  0x3a   :  { %287 = vmatprep.mubr.f32.mxu0 %v2195_v0  ;;  %1842 = vmatpush1.bf16.msra.mxu0 %v1841_v2 }
  0x3d   :  { %1712 = vmatmul.mubr.msk.f32.gmra.mrb[6].mxu0 %vm49_vm1, %v62_v3 }
  0x3e   :  { %387 = vmatprep.mubr.f32.mxu0 %v2195_v0 }
  0x41   :  { %1725 = vmatmul.mubr.msk.f32.vlgmr.msra.gmra.mrb[0].mxu0 %vm49_vm1, %v294_v4  ;;  %v1873_v4 = vpack.c.bf16 %v820_v1, %v818_v63  ;;  %v835_v1 = vld [vmem:[#allocation4 + $0x348] sm:$0xff] }
  0x42   :  { %393 = vmatprep.mubr.f32.mxu0 %v2195_v0 }
  0x45   :  { %1726 = vmatmul.mubr.msk.f32.gmra.mrb[2].mxu0 %vm49_vm1, %v295_v5 }
  0x46   :  { %399 = vmatprep.mubr.f32.mxu0 %v2195_v0 }
  0x49   :  { %1727 = vmatmul.mubr.msk.f32.gmra.mrb[4].mxu0 %vm49_vm1, %v296_v6 }
  0x4a   :  { %405 = vmatprep.mubr.f32.mxu0 %v2195_v0  ;;  %v800_v0 = vld [vmem:[#allocation4 + $0x230] sm:$0xff] }
  0x4b   :  { %v1853_v27 = vpack.c.bf16 %v800_v0, %v798_v24 }
  0x4d   :  { %1728 = vmatmul.mubr.msk.f32.gmra.mrb[6].mxu0 %vm49_vm1, %v297_v7  ;;  %1854 = vmatpush1.bf16.msra.mxu1 %v1853_v27  ;;  %v823_v7 = vld [vmem:[#allocation4 + $0x2e8] sm:$0xff]  ;;  %v1879_v27 = vpack.c.bf16 %v829_v23, %v827_v22 }
  0x4e   :  { %1856 = vmatprep.subr.bf16.mxu1 %v1855_v28  ;;  %v1875_v12 = vpack.c.bf16 %v825_v8, %v823_v7  ;;  %v826_v28 = vld [vmem:[#allocation4 + $0x300] sm:$0xff] }
  0x4f   :  { %v1881_v32 = vpack.c.bf16 %v828_v29, %v826_v28 }
  0x51   :  { %1858 = vmatpush1.bf16.msra.mxu1 %v1857_v33 }
  0x52   :  { %1860 = vmatprep.subr.bf16.mxu1 %v1859_v34 }
  0x55   :  { %1862 = vmatpush1.bf16.msra.mxu1 %v1861_v39  ;;  %v831_v39 = vld [vmem:[#allocation4 + $0x328] sm:$0xff] }
  0x56   :  { %1864 = vmatprep.subr.bf16.mxu1 %v1863_v40 }
  0x59   :  { %1866 = vmatpush1.bf16.msra.mxu1 %v1865_v45  ;;  %v833_v45 = vld [vmem:[#allocation4 + $0x338] sm:$0xff] }
  0x5a   :  { %1868 = vmatprep.subr.bf16.mxu1 %v1867_v46  ;;  %v830_v46 = vld [vmem:[#allocation4 + $0x320] sm:$0xff] }
  0x5b   :  { %v1885_v63 = vpack.c.bf16 %v832_v47, %v830_v46  ;;  %v2198_v46 = vmov 1983009808  }
  0x5c   :  { %v628_v47 = vunpack.c.l.s4 %v2198_v46 }
  0x5d   :  { %1870 = vmatpush1.bf16.msra.mxu1 %v1869_v49 }
  0x5e   :  { %1872 = vmatprep.subr.bf16.mxu1 %v1871_v62  ;;  %v1883_v62 = vpack.c.bf16 %v833_v45, %v831_v39 }
  0x61   :  { %1874 = vmatpush1.bf16.msra.mxu1 %v1873_v4 }
  0x62   :  { %1876 = vmatprep.subr.bf16.mxu1 %v1875_v12 }
  0x65   :  { %1878 = vmatpush1.bf16.msra.mxu1 %v1877_v17 }
  0x66   :  { %1880 = vmatprep.subr.bf16.mxu1 %v1879_v27 }
  0x69   :  { %1882 = vmatpush1.bf16.msra.mxu1 %v1881_v32 }
  0x6a   :  { %1884 = vmatprep.subr.bf16.mxu1 %v1883_v62 }
  0x6d   :  { %1886 = vmatpush1.bf16.msra.mxu1 %v1885_v63 }
 0x114   :  { %v389_v60 = vpop.f32.mrb[0].mxu0 }
 0x115   :  { %v432_v2 = vadd.f32 %v425_v56, %v389_v60  ;;  %v391_v3 = vpop.f32.mrb[1].mxu0 }
 0x116   :  { %v433_v5 = vadd.f32 %v2432_v57, %v391_v3 }
 0x117   :  { %v440_v6 = vmax.f32 %v432_v2, 0.0  ;;  %v837_v2 = vld [vmem:[#allocation4 + $0x358] sm:$0xff] }
 0x118   :  { %v441_v10 = vmax.f32 %v433_v5, 0.0  ;;  %v395_v11 = vpop.f32.mrb[2].mxu0  ;;  %v1887_v7 = vpack.c.bf16 %v837_v2, %v835_v1 }
 0x119   :  { %v434_v15 = vadd.f32 %v425_v56, %v395_v11  ;;  %v397_v16 = vpop.f32.mrb[3].mxu0 }
 0x11a   :  { %v456_v18 = vcombine.low %v440_v6, %v441_v10  ;;  %v457_v19 = vcombine.high %v440_v6, %v441_v10  ;;  %v435_v20 = vadd.f32 %v2432_v57, %v397_v16  ;;  %v834_v6 = vld [vmem:[#allocation4 + $0x340] sm:$0xff]  ;;  %1888 = vmatprep.subr.bf16.mxu1 %v1887_v7 }
 0x11b   :  { %v442_v21 = vmax.f32 %v434_v15, 0.0  ;;  %v841_v15 = vld [vmem:[#allocation4 + $0x378] sm:$0xff] }
 0x11c   :  { %v485_v24 = vrot.slane %v457_v19, %v2436_v9  ;;  %v443_v0 = vmax.f32 %v435_v20, 0.0  ;;  %v401_v25 = vpop.f32.mrb[4].mxu0  ;;  %v478_v26 = vrot.slane %v456_v18, %v2436_v9  ;;  %v838_v20 = vld [vmem:[#allocation4 + $0x360] sm:$0xff]  ;;  %v1891_v22 = vpack.c.bf16 %v841_v15, %v839_v14 }
 0x11d   :  { %v436_v30 = vadd.f32 %v425_v56, %v401_v25  ;;  %v403_v31 = vpop.f32.mrb[5].mxu0  ;;  %v845_v25 = vld [vmem:[#allocation4 + $0x398] sm:$0xff] }
 0x11e   :  { %v458_v33 = vcombine.low %v442_v21, %v443_v0  ;;  %v459_v34 = vcombine.high %v442_v21, %v443_v0  ;;  %v437_v35 = vadd.f32 %v2432_v57, %v403_v31  ;;  %v536_v36 = vrot.slane %v478_v26, 4  ;;  %v840_v21 = vld [vmem:[#allocation4 + $0x370] sm:$0xff]  ;;  %v843_v0 = vld [vmem:[#allocation4 + $0x388] sm:$0xff] }
 0x11f   :  { %v444_v37 = vmax.f32 %v436_v30, 0.0  ;;  %v537_v38 = vrot.slane %v485_v24, 4  ;;  %v1895_v29 = vpack.c.bf16 %v845_v25, %v843_v0  ;;  %v842_v30 = vld [vmem:[#allocation4 + $0x380] sm:$0xff]  ;;  %v844_v31 = vld [vmem:[#allocation4 + $0x390] sm:$0xff] }
 0x120   :  { %v499_v40 = vrot.slane %v459_v34, %v2436_v9  ;;  %v445_v41 = vmax.f32 %v437_v35, 0.0  ;;  %v407_v42 = vpop.f32.mrb[6].mxu0  ;;  %v2443_v43 = vmax.f32 %v478_v26, %v536_v36  ;;  %v492_v44 = vrot.slane %v458_v33, %v2436_v9  ;;  %v847_v33 = vld [vmem:[#allocation4 + $0x3a8] sm:$0xff]  ;;  %v849_v34 = vld [vmem:[#allocation4 + $0x3b8] sm:$0xff] }
 0x121   :  { %v438_v48 = vadd.f32 %v425_v56, %v407_v42  ;;  %v409_v49 = vpop.f32.mrb[7].mxu0  ;;  %v2446_v52 = vmax.f32 %v485_v24, %v537_v38  ;;  %v1893_v24 = vpack.c.bf16 %v840_v21, %v838_v20  ;;  %v1897_v32 = vpack.c.bf16 %v844_v31, %v842_v30  ;;  %v848_v38 = vld [vmem:[#allocation4 + $0x3b0] sm:$0xff] }
 0x122   :  { %v460_v54 = vcombine.low %v444_v37, %v445_v41  ;;  %v461_v55 = vcombine.high %v444_v37, %v445_v41  ;;  %v439_v58 = vadd.f32 %v2432_v57, %v409_v49  ;;  %568 = vrot.lane.b32.xlu0 %v2443_v43, %s2197_s2  ;;  %v538_v59 = vrot.slane %v492_v44, 4  ;;  %v836_v57 = vld [vmem:[#allocation4 + $0x350] sm:$0xff]  ;;  %v846_v37 = vld [vmem:[#allocation4 + $0x3a0] sm:$0xff]  ;;  %v701_v41 = vld [vmem:[#allocation4 + $0x18] sm:$0xff] }
 0x123   :  { %v446_v60 = vmax.f32 %v438_v48, 0.0  ;;  %v539_v61 = vrot.slane %v499_v40, 4  ;;  %v1889_v13 = vpack.c.bf16 %v836_v57, %v834_v6  ;;  %v1899_v36 = vpack.c.bf16 %v849_v34, %v847_v33  ;;  %v698_v33 = vld [vmem:[#allocation4] sm:$0xff] }
 0x124   :  { %v506_v56 = vrot.slane %v460_v54, %v2436_v9  ;;  %v513_v3 = vrot.slane %v461_v55, %v2436_v9  ;;  %v447_v4 = vmax.f32 %v439_v58, 0.0  ;;  %v2453_v5 = vmax.f32 %v492_v44, %v538_v59 }
 0x125   :  { %v2459_v12 = vmax.f32 %v499_v40, %v539_v61  ;;  %1890 = vmatpush1.bf16.msra.mxu1 %v1889_v13  ;;  %v1901_v39 = vpack.c.bf16 %v848_v38, %v846_v37  ;;  %v699_v40 = vld [vmem:[#allocation4 + $0x8] sm:$0xff]  ;;  %v700_v37 = vld [vmem:[#allocation4 + $0x10] sm:$0xff] }
 0x126   :  { %v462_v8 = vcombine.low %v446_v60, %v447_v4  ;;  %v463_v10 = vcombine.high %v446_v60, %v447_v4  ;;  %570 = vrot.lane.b32.xlu0 %v2446_v52, %s2197_s2  ;;  %572 = vrot.lane.b32.xlu1 %v2453_v5, %s2197_s2  ;;  %v540_v11 = vrot.slane %v506_v56, 4  ;;  %v541_v19 = vrot.slane %v513_v3, 4  ;;  %v703_v38 = vld [vmem:[#allocation4 + $0x28] sm:$0xff] }
 0x127   :  { %1892 = vmatprep.subr.bf16.mxu1 %v1891_v22  ;;  %v1903_v42 = vpack.c.bf16 %v701_v41, %v699_v40  ;;  %v629_v60 = vunpack.c.0.s8 %v628_v47 }
 0x128   :  { %v520_v16 = vrot.slane %v462_v8, %v2436_v9  ;;  %v527_v17 = vrot.slane %v463_v10, %v2436_v9  ;;  %v2463_v18 = vmax.f32 %v506_v56, %v540_v11  ;;  %v2469_v26 = vmax.f32 %v513_v3, %v541_v19 }
 0x129   :  { %1894 = vmatpush1.bf16.msra.mxu1 %v1893_v24  ;;  %v2488_v6 = vsub.s32 %v629_v60, %v2421_v50  ;;  %v707_v60 = vld [vmem:[#allocation4 + $0x48] sm:$0xff] }
 0x12a   :  { %574 = vrot.lane.b32.xlu1 %v2459_v12, %s2197_s2  ;;  %576 = vrot.lane.b32.xlu0 %v2463_v18, %s2197_s2  ;;  %v542_v23 = vrot.slane %v520_v16, 4  ;;  %v543_v28 = vrot.slane %v527_v17, 4 }
 0x12b   :  { %1896 = vmatprep.subr.bf16.mxu1 %v1895_v29 }
 0x12c   :  { %v2471_v27 = vmax.f32 %v520_v16, %v542_v23  ;;  %v2477_v35 = vmax.f32 %v527_v17, %v543_v28 }
 0x12d   :  { %1898 = vmatpush1.bf16.msra.mxu1 %v1897_v32 }
 0x12e   :  { %578 = vrot.lane.b32.xlu1 %v2469_v26, %s2197_s2  ;;  %580 = vrot.lane.b32.xlu0 %v2471_v27, %s2197_s2 }
 0x12f   :  { %1900 = vmatprep.subr.bf16.mxu1 %v1899_v36 }
 0x131   :  { %1902 = vmatpush1.bf16.msra.mxu1 %v1901_v39 }
 0x132   :  { %582 = vrot.lane.b32.xlu1 %v2477_v35, %s2197_s2  ;;  %1904 = vmatprep.subr.bf16.mxu1 %v1903_v42 }
 0x194   :  { %v569_v44 = vpop.permute.xlu0 %568 }
 0x195   :  { %v584_v45 = vrot.slane %v569_v44, 2 }
 0x197   :  { %v593_v58 = vsel %vm592_vm3, %v569_v44, %v584_v45 }
 0x198   :  { %v571_v48 = vpop.permute.xlu0 %570  ;;  %v573_v49 = vpop.permute.xlu1 %572  ;;  %v609_v56 = vmax.f32 %v2443_v43, %v593_v58  ;;  %v704_v58 = vld [vmem:[#allocation4 + $0x30] sm:$0xff] }
 0x199   :  { %v585_v54 = vrot.slane %v571_v48, 2  ;;  %v586_v55 = vrot.slane %v573_v49, 2 }
 0x19b   :  { %v594_v59 = vsel %vm592_vm3, %v571_v48, %v585_v54  ;;  %v595_v1 = vsel %vm592_vm3, %v573_v49, %v586_v55  ;;  %v1905_v48 = vpack.c.bf16 %v700_v37, %v698_v33  ;;  %v702_v55 = vld [vmem:[#allocation4 + $0x20] sm:$0xff]  ;;  %v729_v37 = vld [vmem:[#allocation4 + $0xf8] sm:$0xff] }
 0x19c   :  { %v610_v61 = vmax.f32 %v2446_v52, %v594_v59  ;;  %v575_v62 = vpop.permute.xlu1 %574  ;;  %v577_v63 = vpop.permute.xlu0 %576  ;;  %v611_v7 = vmax.f32 %v2453_v5, %v595_v1  ;;  %v722_v33 = vld [vmem:[#allocation4 + $0xc0] sm:$0xff] }
 0x19d   :  { %v587_v2 = vrot.slane %v575_v62, 2  ;;  %v588_v4 = vrot.slane %v577_v63, 2 }
 0x19e   :  { %v625_v57 = vcombine.low %v609_v56, %v610_v61  ;;  %v709_v61 = vld [vmem:[#allocation4 + $0x58] sm:$0xff]  ;;  %v711_v56 = vld [vmem:[#allocation4 + $0x68] sm:$0xff] }
 0x19f   :  { %v596_v3 = vsel %vm592_vm3, %v575_v62, %v587_v2  ;;  %v597_v15 = vsel %vm592_vm3, %v577_v63, %v588_v4  ;;  %v1909_v62 = vpack.c.bf16 %v704_v58, %v702_v55  ;;  %v706_v63 = vld [vmem:[#allocation4 + $0x40] sm:$0xff]  ;;  %v1911_v1 = vpack.c.bf16 %v709_v61, %v707_v60  ;;  %v708_v2 = vld [vmem:[#allocation4 + $0x50] sm:$0xff]  ;;  %v739_v60 = vld [vmem:[#allocation4 + $0x148] sm:$0xff] }
 0x1a0   :  { %v612_v8 = vmax.f32 %v2459_v12, %v596_v3  ;;  %v579_v10 = vpop.permute.xlu1 %578  ;;  %v581_v52 = vpop.permute.xlu0 %580  ;;  %v633_v16 = vrot.slane %v625_v57, %v2488_v6  ;;  %v613_v23 = vmax.f32 %v2463_v18, %v597_v15  ;;  %v713_v3 = vld [vmem:[#allocation4 + $0x78] sm:$0xff]  ;;  %v734_v58 = vld [vmem:[#allocation4 + $0x120] sm:$0xff] }
 0x1a1   :  { %v589_v11 = vrot.slane %v579_v10, 2  ;;  %v590_v13 = vrot.slane %v581_v52, 2  ;;  %v741_v61 = vld [vmem:[#allocation4 + $0x158] sm:$0xff] }
 0x1a2   :  { %v626_v14 = vcombine.low %v611_v7, %v612_v8 }
 0x1a3   :  { %v598_v43 = vsel %vm592_vm3, %v579_v10, %v589_v11  ;;  %v599_v20 = vsel %vm592_vm3, %v581_v52, %v590_v13 }
 0x1a4   :  { %v640_v17 = vrot.slane %v626_v14, %v2488_v6  ;;  %v614_v19 = vmax.f32 %v2469_v26, %v598_v43  ;;  %v583_v5 = vpop.permute.xlu1 %582  ;;  %v615_v24 = vmax.f32 %v2471_v27, %v599_v20  ;;  %v1913_v14 = vpack.c.bf16 %v708_v2, %v706_v63  ;;  %v715_v20 = vld [vmem:[#allocation4 + $0x88] sm:$0xff]  ;;  %v740_v2 = vld [vmem:[#allocation4 + $0x150] sm:$0xff] }
 0x1a5   :  { %v591_v21 = vrot.slane %v583_v5, 2  ;;  %v1915_v43 = vpack.c.bf16 %v713_v3, %v711_v56  ;;  %v1943_v63 = vpack.c.bf16 %v741_v61, %v739_v60  ;;  %v743_v56 = vld [vmem:[#allocation4 + $0x168] sm:$0xff]  ;;  %v745_v3 = vld [vmem:[#allocation4 + $0x178] sm:$0xff]  ;;  %v1058_v61 = vld [vmem:[#allocation4 + $0x420] sm:$0xff] }
 0x1a6   :  { %v641_v12 = vcombine.low %v633_v16, %v640_v17  ;;  %v642_v22 = vcombine.high %v633_v16, %v640_v17  ;;  %v643_v29 = vcombine.low %v613_v23, %v614_v19  ;;  %v710_v16 = vld [vmem:[#allocation4 + $0x60] sm:$0xff]  ;;  %v712_v17 = vld [vmem:[#allocation4 + $0x70] sm:$0xff] }
 0x1a7   :  { %v600_v0 = vsel %vm592_vm3, %v583_v5, %v591_v21  ;;  %v717_v5 = vld [vmem:[#allocation4 + $0x98] sm:$0xff]  ;;  %v714_v23 = vld [vmem:[#allocation4 + $0x80] sm:$0xff] }
 0x1a8   :  { %v661_v25 = vrot.slane %v641_v12, 7  ;;  %v662_v28 = vrot.slane %v642_v22, 7  ;;  %v616_v30 = vmax.f32 %v2477_v35, %v600_v0  ;;  %v651_v18 = vrot.slane %v643_v29, %v2488_v6  ;;  %v705_v35 = vld [vmem:[#allocation4 + $0x38] sm:$0xff]  ;;  %v719_v0 = vld [vmem:[#allocation4 + $0xa8] sm:$0xff] }
 0x1a9   :  { %v1907_v54 = vpack.c.bf16 %v705_v35, %v703_v38  ;;  %v1917_v12 = vpack.c.bf16 %v712_v17, %v710_v16  ;;  %v1919_v22 = vpack.c.bf16 %v717_v5, %v715_v20  ;;  %v753_v16 = vld [vmem:[#allocation4 + $0x1b8] sm:$0xff]  ;;  %v750_v20 = vld [vmem:[#allocation4 + $0x1a0] sm:$0xff]  ;;  %v752_v5 = vld [vmem:[#allocation4 + $0x1b0] sm:$0xff] }
 0x1aa   :  { %669 = vst [vmem:[#allocation3] sm:$0xfe] %v661_v25  ;;  %671 = vst.msk [vmem:[#allocation3 + $0x8] sm:$0xfe] %vm670_vm4, %v662_v28  ;;  %v644_v26 = vcombine.low %v615_v24, %v616_v30  ;;  %v716_v24 = vld [vmem:[#allocation4 + $0x90] sm:$0xff]  ;;  %v718_v30 = vld [vmem:[#allocation4 + $0xa0] sm:$0xff] }
 0x1ab   :  { %672 = vst [vmem:[#allocation3 + $0x10] sm:$0x1] %v661_v25  ;;  %674 = vst.msk [vmem:[#allocation3 + $0x18] sm:$0x1] %vm673_vm5, %v662_v28  ;;  %v721_v25 = vld [vmem:[#allocation4 + $0xb8] sm:$0xff]  ;;  %v1921_v28 = vpack.c.bf16 %v716_v24, %v714_v23  ;;  %v754_v24 = vld [vmem:[#allocation4 + $0x1c0] sm:$0xff] }
 0x1ac   :  { %v658_v31 = vrot.slane %v644_v26, %v2488_v6  ;;  %v1923_v29 = vpack.c.bf16 %v721_v25, %v719_v0  ;;  %v720_v26 = vld [vmem:[#allocation4 + $0xb0] sm:$0xff]  ;;  %v1047_v25 = vld [vmem:[#allocation4 + $0x3c8] sm:$0xff] }
 0x1ad   :  { %v756_v0 = vld [vmem:[#allocation4 + $0x1d0] sm:$0xff] }
 0x1ae   :  { %v659_v32 = vcombine.low %v651_v18, %v658_v31  ;;  %v660_v27 = vcombine.high %v651_v18, %v658_v31  ;;  %v723_v18 = vld [vmem:[#allocation4 + $0xc8] sm:$0xff]  ;;  %v725_v31 = vld [vmem:[#allocation4 + $0xd8] sm:$0xff] }
 0x1b0   :  { %v663_v34 = vrot.slane %v659_v32, 7  ;;  %v664_v36 = vrot.slane %v660_v27, 7  ;;  %v1925_v32 = vpack.c.bf16 %v720_v26, %v718_v30  ;;  %v1927_v27 = vpack.c.bf16 %v725_v31, %v723_v18  ;;  %v1046_v26 = vld [vmem:[#allocation4 + $0x3c0] sm:$0xff]  ;;  %v1048_v18 = vld [vmem:[#allocation4 + $0x3d0] sm:$0xff]  ;;  %v1051_v31 = vld [vmem:[#allocation4 + $0x3e8] sm:$0xff] }
 0x1b1   :  { %v759_v39 = vld [vmem:[#allocation3 + $0x8] sm:$0xfe]  ;;  %v758_v41 = vld [vmem:[#allocation3] sm:$0xfe] }
 0x1b2   :  { %v761_v40 = vld [vmem:[#allocation3 + $0x18] sm:$0x1]  ;;  %675 = vst [vmem:[#allocation3 + $0x20] sm:$0xfe] %v663_v34  ;;  %676 = vst.msk [vmem:[#allocation3 + $0x28] sm:$0xfe] %vm670_vm4, %v664_v36 }
 0x1b3   :  { %677 = vst [vmem:[#allocation3 + $0x30] sm:$0x1] %v663_v34  ;;  %678 = vst.msk [vmem:[#allocation3 + $0x38] sm:$0x1] %vm673_vm5, %v664_v36  ;;  %v778_v42 = vrot.slane %v759_v39, 1  ;;  %v779_v44 = vrot.slane %v761_v40, 1 }
 0x1b4   :  { %v760_v45 = vld [vmem:[#allocation3 + $0x10] sm:$0x1]  ;;  %v775_v46 = vrot.slane %v758_v41, 1  ;;  %v695_v21 = vld [vmem:[#allocation3 + $0x8] sm:$0xff]  ;;  %v726_v39 = vld [vmem:[#allocation4 + $0xe0] sm:$0xff] }
 0x1b5   :  { %v776_v47 = vrot.slane %v760_v45, 1  ;;  %v780_v49 = vsel %vm774_vm6, %v778_v42, %v779_v44  ;;  %v724_v34 = vld [vmem:[#allocation4 + $0xd0] sm:$0xff]  ;;  %v727_v36 = vld [vmem:[#allocation4 + $0xe8] sm:$0xff]  ;;  %v733_v42 = vld [vmem:[#allocation4 + $0x118] sm:$0xff] }
 0x1b6   :  { %1729 = vmatprep.mubr.msk.f32.mxu1 %vm592_vm3, %v780_v49  ;;  %v1929_v38 = vpack.c.bf16 %v724_v34, %v722_v33  ;;  %v1931_v35 = vpack.c.bf16 %v729_v37, %v727_v36  ;;  %v728_v40 = vld [vmem:[#allocation4 + $0xf0] sm:$0xff]  ;;  %v731_v41 = vld [vmem:[#allocation4 + $0x108] sm:$0xff]  ;;  %v737_v49 = vld [vmem:[#allocation4 + $0x138] sm:$0xff] }
 0x1b7   :  { %v777_v59 = vsel %vm774_vm6, %v775_v46, %v776_v47  ;;  %v1933_v44 = vpack.c.bf16 %v728_v40, %v726_v39  ;;  %v1935_v45 = vpack.c.bf16 %v733_v42, %v731_v41  ;;  %v730_v46 = vld [vmem:[#allocation4 + $0x100] sm:$0xff]  ;;  %v732_v47 = vld [vmem:[#allocation4 + $0x110] sm:$0xff]  ;;  %v1015_v33 = vld [vmem:[#allocation3 + $0x8] sm:$0xfc] }
 0x1b8   :  { %919 = vmatmul.mubr.f32.vlgmr.msra.gmra.mrb[0].mxu1 %v777_v59  ;;  %v736_v59 = vld [vmem:[#allocation4 + $0x130] sm:$0xff]  ;;  %v1017_v34 = vld [vmem:[#allocation3 + $0x18] sm:$0x3]  ;;  %v1050_v37 = vld [vmem:[#allocation4 + $0x3e0] sm:$0xff]  ;;  %v1034_v42 = vrot.slane %v1015_v33, 2 }
 0x1b9   :  { %1906 = vmatpush1.bf16.msra.mxu1 %v1905_v48  ;;  %v763_v4 = vld [vmem:[#allocation3 + $0x28] sm:$0xfe]  ;;  %v762_v7 = vld [vmem:[#allocation3 + $0x20] sm:$0xfe]  ;;  %v1057_v40 = vld [vmem:[#allocation4 + $0x418] sm:$0xff] }
 0x1ba   :  { %1908 = vmatprep.subr.bf16.mxu1 %v1907_v54  ;;  %v765_v57 = vld [vmem:[#allocation3 + $0x38] sm:$0x1]  ;;  %v784_v8 = vrot.slane %v763_v4, 1  ;;  %v764_v52 = vld [vmem:[#allocation3 + $0x30] sm:$0x1]  ;;  %v781_v11 = vrot.slane %v762_v7, 1  ;;  %v1937_v54 = vpack.c.bf16 %v732_v47, %v730_v46 }
 0x1bb   :  { %v785_v10 = vrot.slane %v765_v57, 1  ;;  %v782_v13 = vrot.slane %v764_v52, 1  ;;  %v735_v48 = vld [vmem:[#allocation4 + $0x128] sm:$0xff]  ;;  %v1947_v57 = vpack.c.bf16 %v745_v3, %v743_v56  ;;  %v742_v7 = vld [vmem:[#allocation4 + $0x160] sm:$0xff]  ;;  %v749_v52 = vld [vmem:[#allocation4 + $0x198] sm:$0xff] }
 0x1bc   :  { %v1939_v55 = vpack.c.bf16 %v737_v49, %v735_v48  ;;  %v1055_v39 = vld [vmem:[#allocation4 + $0x408] sm:$0xff]  ;;  %v1054_v47 = vld [vmem:[#allocation4 + $0x400] sm:$0xff]  ;;  %v1056_v48 = vld [vmem:[#allocation4 + $0x410] sm:$0xff] }
 0x1bd   :  { %1910 = vmatpush1.bf16.msra.mxu1 %v1909_v62  ;;  %v786_v15 = vsel %vm774_vm6, %v784_v8, %v785_v10  ;;  %v783_v19 = vsel %vm774_vm6, %v781_v11, %v782_v13  ;;  %v1941_v62 = vpack.c.bf16 %v736_v59, %v734_v58  ;;  %v744_v8 = vld [vmem:[#allocation4 + $0x170] sm:$0xff]  ;;  %v747_v10 = vld [vmem:[#allocation4 + $0x188] sm:$0xff]  ;;  %v1971_v46 = vpack.c.bf16 %v1057_v40, %v1055_v39  ;;  %v696_v49 = vld [vmem:[#allocation3 + $0x20] sm:$0xff] }
 0x1be   :  { %1912 = vmatprep.subr.bf16.mxu1 %v1911_v1  ;;  %1730 = vmatprep.mubr.msk.f32.mxu1 %vm592_vm3, %v786_v15  ;;  %v738_v1 = vld [vmem:[#allocation4 + $0x140] sm:$0xff]  ;;  %v1949_v11 = vpack.c.bf16 %v744_v8, %v742_v7  ;;  %v1951_v13 = vpack.c.bf16 %v749_v52, %v747_v10  ;;  %v748_v15 = vld [vmem:[#allocation4 + $0x190] sm:$0xff]  ;;  %v697_v41 = vld [vmem:[#allocation3 + $0x28] sm:$0xff]  ;;  %v1973_v59 = vpack.c.bf16 %v1056_v48, %v1054_v47 }
 0x1bf   :  { %925 = vmatmul.mubr.f32.gmra.mrb[2].mxu1 %v783_v19  ;;  %v1945_v4 = vpack.c.bf16 %v740_v2, %v738_v1  ;;  %v1065_v1 = vld [vmem:[#allocation4 + $0x458] sm:$0xff]  ;;  %v1062_v3 = vld [vmem:[#allocation4 + $0x440] sm:$0xff]  ;;  %v1087_v33 = vld [vmem:[#allocation4 + $0x508] sm:$0xff] }
 0x1c0   :  { %1731 = vmatprep.mubr.msk.f32.mxu1 %vm592_vm3, %v695_v21  ;;  %v755_v21 = vld [vmem:[#allocation4 + $0x1c8] sm:$0xff]  ;;  %v1069_v7 = vld [vmem:[#allocation4 + $0x478] sm:$0xff]  ;;  %v1066_v52 = vld [vmem:[#allocation4 + $0x460] sm:$0xff] }
 0x1c1   :  { %1914 = vmatpush1.bf16.msra.mxu1 %v1913_v14  ;;  %v746_v14 = vld [vmem:[#allocation4 + $0x180] sm:$0xff]  ;;  %v1091_v39 = vld [vmem:[#allocation4 + $0x528] sm:$0xff]  ;;  %v1093_v40 = vld [vmem:[#allocation4 + $0x538] sm:$0xff] }
 0x1c2   :  { %1916 = vmatprep.subr.bf16.mxu1 %v1915_v43  ;;  %v751_v43 = vld [vmem:[#allocation4 + $0x1a8] sm:$0xff]  ;;  %v1953_v17 = vpack.c.bf16 %v748_v15, %v746_v14  ;;  %v1073_v14 = vld [vmem:[#allocation4 + $0x498] sm:$0xff] }
 0x1c3   :  { %v1955_v19 = vpack.c.bf16 %v753_v16, %v751_v43  ;;  %v1070_v16 = vld [vmem:[#allocation4 + $0x480] sm:$0xff]  ;;  %v1097_v47 = vld [vmem:[#allocation4 + $0x558] sm:$0xff] }
 0x1c5   :  { %1918 = vmatpush1.bf16.msra.mxu1 %v1917_v12  ;;  %v757_v12 = vld [vmem:[#allocation4 + $0x1d8] sm:$0xff] }
 0x1c6   :  { %1920 = vmatprep.subr.bf16.mxu1 %v1919_v22  ;;  %v1957_v22 = vpack.c.bf16 %v752_v5, %v750_v20  ;;  %v1959_v23 = vpack.c.bf16 %v757_v12, %v755_v21  ;;  %v1077_v20 = vld [vmem:[#allocation4 + $0x4b8] sm:$0xff]  ;;  %v1074_v12 = vld [vmem:[#allocation4 + $0x4a0] sm:$0xff] }
 0x1c9   :  { %1922 = vmatpush1.bf16.msra.mxu1 %v1921_v28  ;;  %v1049_v28 = vld [vmem:[#allocation4 + $0x3d8] sm:$0xff] }
 0x1ca   :  { %1924 = vmatprep.subr.bf16.mxu1 %v1923_v29  ;;  %v1961_v29 = vpack.c.bf16 %v756_v0, %v754_v24  ;;  %v1963_v30 = vpack.c.bf16 %v1049_v28, %v1047_v25  ;;  %v1081_v24 = vld [vmem:[#allocation4 + $0x4d8] sm:$0xff]  ;;  %v1078_v28 = vld [vmem:[#allocation4 + $0x4c0] sm:$0xff] }
 0x1cd   :  { %1926 = vmatpush1.bf16.msra.mxu1 %v1925_v32  ;;  %v1053_v32 = vld [vmem:[#allocation4 + $0x3f8] sm:$0xff] }
 0x1ce   :  { %1928 = vmatprep.subr.bf16.mxu1 %v1927_v27  ;;  %v1965_v27 = vpack.c.bf16 %v1048_v18, %v1046_v26  ;;  %v1967_v36 = vpack.c.bf16 %v1053_v32, %v1051_v31  ;;  %v1085_v26 = vld [vmem:[#allocation4 + $0x4f8] sm:$0xff]  ;;  %v1082_v32 = vld [vmem:[#allocation4 + $0x4e0] sm:$0xff] }
 0x1d1   :  { %1930 = vmatpush1.bf16.msra.mxu1 %v1929_v38  ;;  %v1052_v38 = vld [vmem:[#allocation4 + $0x3f0] sm:$0xff] }
 0x1d2   :  { %1932 = vmatprep.subr.bf16.mxu1 %v1931_v35  ;;  %v694_v35 = vld [vmem:[#allocation3] sm:$0xff] }
 0x1d5   :  { %1934 = vmatpush1.bf16.msra.mxu1 %v1933_v44  ;;  %v1035_v44 = vrot.slane %v1017_v34, 2  ;;  %v1089_v34 = vld [vmem:[#allocation4 + $0x518] sm:$0xff] }
 0x1d6   :  { %1936 = vmatprep.subr.bf16.mxu1 %v1935_v45  ;;  %v1969_v45 = vpack.c.bf16 %v1052_v38, %v1050_v37  ;;  %v2003_v37 = vpack.c.bf16 %v1089_v34, %v1087_v33  ;;  %v1086_v38 = vld [vmem:[#allocation4 + $0x500] sm:$0xff]  ;;  %v1304_v33 = vld [vmem:[%s2850_s5 + $0x40] sm:$0xff]  ;;  %v1305_v34 = vld [vmem:[%s2850_s5 + $0x48] sm:$0xff] }
 0x1d7   :  { %v1036_v58 = vsel %vm1030_vm7, %v1034_v42, %v1035_v44  ;;  %v2007_v42 = vpack.c.bf16 %v1093_v40, %v1091_v39  ;;  %v1090_v44 = vld [vmem:[#allocation4 + $0x520] sm:$0xff]  ;;  %v1308_v39 = vld [vmem:[%s2850_s5 + $0x60] sm:$0xff]  ;;  %v1309_v40 = vld [vmem:[%s2850_s5 + $0x68] sm:$0xff] }
 0x1d9   :  { %1938 = vmatpush1.bf16.msra.mxu1 %v1937_v54  ;;  %v1059_v54 = vld [vmem:[#allocation4 + $0x428] sm:$0xff] }
 0x1da   :  { %1940 = vmatprep.subr.bf16.mxu1 %v1939_v55  ;;  %v1061_v55 = vld [vmem:[#allocation4 + $0x438] sm:$0xff] }
 0x1db   :  { %v1975_v60 = vpack.c.bf16 %v1061_v55, %v1059_v54  ;;  %v1094_v54 = vld [vmem:[#allocation4 + $0x540] sm:$0xff]  ;;  %v1096_v55 = vld [vmem:[#allocation4 + $0x550] sm:$0xff] }
 0x1dd   :  { %1942 = vmatpush1.bf16.msra.mxu1 %v1941_v62  ;;  %v1060_v62 = vld [vmem:[#allocation4 + $0x430] sm:$0xff] }
 0x1de   :  { %1944 = vmatprep.subr.bf16.mxu1 %v1943_v63  ;;  %v1063_v63 = vld [vmem:[#allocation4 + $0x448] sm:$0xff]  ;;  %v1977_v2 = vpack.c.bf16 %v1060_v62, %v1058_v61  ;;  %v1098_v62 = vld [vmem:[#allocation4 + $0x560] sm:$0xff] }
 0x1df   :  { %v1979_v56 = vpack.c.bf16 %v1065_v1, %v1063_v63  ;;  %v1100_v63 = vld [vmem:[#allocation4 + $0x570] sm:$0xff]  ;;  %v1103_v1 = vld [vmem:[#allocation4 + $0x588] sm:$0xff] }
 0x1e1   :  { %1946 = vmatpush1.bf16.msra.mxu1 %v1945_v4  ;;  %v1064_v4 = vld [vmem:[#allocation4 + $0x450] sm:$0xff] }
 0x1e2   :  { %1948 = vmatprep.subr.bf16.mxu1 %v1947_v57  ;;  %v1067_v57 = vld [vmem:[#allocation4 + $0x468] sm:$0xff]  ;;  %v1981_v8 = vpack.c.bf16 %v1064_v4, %v1062_v3  ;;  %v1102_v4 = vld [vmem:[#allocation4 + $0x580] sm:$0xff] }
 0x1e3   :  { %v1983_v10 = vpack.c.bf16 %v1069_v7, %v1067_v57  ;;  %v1104_v57 = vld [vmem:[#allocation4 + $0x590] sm:$0xff]  ;;  %v1014_v7 = vld [vmem:[#allocation3] sm:$0xfc] }
 0x1e5   :  { %1950 = vmatpush1.bf16.msra.mxu1 %v1949_v11  ;;  %v1068_v11 = vld [vmem:[#allocation4 + $0x470] sm:$0xff] }
 0x1e6   :  { %1952 = vmatprep.subr.bf16.mxu1 %v1951_v13  ;;  %v1071_v13 = vld [vmem:[#allocation4 + $0x488] sm:$0xff]  ;;  %v1985_v15 = vpack.c.bf16 %v1068_v11, %v1066_v52  ;;  %v1021_v11 = vld [vmem:[#allocation3 + $0x38] sm:$0x3] }
 0x1e7   :  { %v1987_v43 = vpack.c.bf16 %v1073_v14, %v1071_v13  ;;  %v1019_v52 = vld [vmem:[#allocation3 + $0x28] sm:$0xfc]  ;;  %v1031_v13 = vrot.slane %v1014_v7, 2 }
 0x1e9   :  { %1954 = vmatpush1.bf16.msra.mxu1 %v1953_v17  ;;  %v1072_v17 = vld [vmem:[#allocation4 + $0x490] sm:$0xff] }
 0x1ea   :  { %1956 = vmatprep.subr.bf16.mxu1 %v1955_v19  ;;  %v1075_v19 = vld [vmem:[#allocation4 + $0x4a8] sm:$0xff]  ;;  %v1989_v5 = vpack.c.bf16 %v1072_v17, %v1070_v16  ;;  %v1018_v16 = vld [vmem:[#allocation3 + $0x20] sm:$0xfc]  ;;  %v1020_v17 = vld [vmem:[#allocation3 + $0x30] sm:$0x3] }
 0x1eb   :  { %v1991_v21 = vpack.c.bf16 %v1077_v20, %v1075_v19  ;;  %v1037_v20 = vrot.slane %v1018_v16, 2 }
 0x1ed   :  { %1958 = vmatpush1.bf16.msra.mxu1 %v1957_v22  ;;  %v1076_v22 = vld [vmem:[#allocation4 + $0x4b0] sm:$0xff] }
 0x1ee   :  { %1960 = vmatprep.subr.bf16.mxu1 %v1959_v23  ;;  %v1079_v23 = vld [vmem:[#allocation4 + $0x4c8] sm:$0xff]  ;;  %v1993_v0 = vpack.c.bf16 %v1076_v22, %v1074_v12  ;;  %v1296_v22 = vld [vmem:[%s2850_s5] sm:$0xff] }
 0x1ef   :  { %v1995_v25 = vpack.c.bf16 %v1081_v24, %v1079_v23  ;;  %v1297_v23 = vld [vmem:[%s2850_s5 + $0x8] sm:$0xff]  ;;  %v1298_v24 = vld [vmem:[%s2850_s5 + $0x10] sm:$0xff] }
 0x1f1   :  { %1962 = vmatpush1.bf16.msra.mxu1 %v1961_v29  ;;  %v1080_v29 = vld [vmem:[#allocation4 + $0x4d0] sm:$0xff] }
 0x1f2   :  { %1964 = vmatprep.subr.bf16.mxu1 %v1963_v30  ;;  %v1083_v30 = vld [vmem:[#allocation4 + $0x4e8] sm:$0xff]  ;;  %v1997_v18 = vpack.c.bf16 %v1080_v29, %v1078_v28 }
 0x1f3   :  { %v1999_v31 = vpack.c.bf16 %v1085_v26, %v1083_v30  ;;  %v1299_v28 = vld [vmem:[%s2850_s5 + $0x18] sm:$0xff]  ;;  %v1300_v30 = vld [vmem:[%s2850_s5 + $0x20] sm:$0xff]  ;;  %v1301_v26 = vld [vmem:[%s2850_s5 + $0x28] sm:$0xff] }
 0x1f4   :  { %1002 = vmatmul.mubr.f32.vlgmr.msra.gmra.mrb[0].mxu1 %v694_v35  ;;  %v1088_v35 = vld [vmem:[#allocation4 + $0x510] sm:$0xff]  ;;  %v2027_v29 = vpack.c.bf16 %v1299_v28, %v1298_v24 }
 0x1f5   :  { %1732 = vmatprep.mubr.msk.f32.mxu1 %vm592_vm3, %v697_v41  ;;  %1966 = vmatpush1.bf16.msra.mxu1 %v1965_v27  ;;  %v1084_v27 = vld [vmem:[#allocation4 + $0x4f0] sm:$0xff]  ;;  %v2005_v41 = vpack.c.bf16 %v1088_v35, %v1086_v38  ;;  %v1307_v38 = vld [vmem:[%s2850_s5 + $0x58] sm:$0xff] }
 0x1f6   :  { %1968 = vmatprep.subr.bf16.mxu1 %v1967_v36  ;;  %v2001_v36 = vpack.c.bf16 %v1084_v27, %v1082_v32  ;;  %v1303_v32 = vld [vmem:[%s2850_s5 + $0x38] sm:$0xff] }
 0x1f8   :  { %1008 = vmatmul.mubr.f32.gmra.mrb[2].mxu1 %v696_v49 }
 0x1f9   :  { %1970 = vmatpush1.bf16.msra.mxu1 %v1969_v45  ;;  %1733 = vmatprep.mubr.msk.f32.mxu1 %vm592_vm3, %v1036_v58  ;;  %v1092_v45 = vld [vmem:[#allocation4 + $0x530] sm:$0xff]  ;;  %v1099_v58 = vld [vmem:[#allocation4 + $0x568] sm:$0xff] }
 0x1fa   :  { %1972 = vmatprep.subr.bf16.mxu1 %v1971_v46  ;;  %v1095_v46 = vld [vmem:[#allocation4 + $0x548] sm:$0xff]  ;;  %v2009_v48 = vpack.c.bf16 %v1092_v45, %v1090_v44 }
 0x1fb   :  { %v2011_v49 = vpack.c.bf16 %v1097_v47, %v1095_v46  ;;  %v1311_v44 = vld [vmem:[%s2850_s5 + $0x78] sm:$0xff]  ;;  %v1312_v46 = vld [vmem:[%s2850_s5 + $0x80] sm:$0xff]  ;;  %v1313_v47 = vld [vmem:[%s2850_s5 + $0x88] sm:$0xff] }
 0x1fd   :  { %1974 = vmatpush1.bf16.msra.mxu1 %v1973_v59  ;;  %v1101_v59 = vld [vmem:[#allocation4 + $0x578] sm:$0xff] }
 0x1fe   :  { %1976 = vmatprep.subr.bf16.mxu1 %v1975_v60  ;;  %v2013_v60 = vpack.c.bf16 %v1096_v55, %v1094_v54  ;;  %v2015_v61 = vpack.c.bf16 %v1101_v59, %v1099_v58  ;;  %v1315_v54 = vld [vmem:[%s2850_s5 + $0x98] sm:$0xff]  ;;  %v1191_v58 = vld [vmem:[%s2849_s4] sm:$0x3] }
 0x1ff   :  { %v1196_v59 = vrot.slane %v1191_v58, %v424_v51 }
 0x201   :  { %1978 = vmatpush1.bf16.msra.mxu1 %v1977_v2  ;;  %v1105_v2 = vld [vmem:[#allocation4 + $0x598] sm:$0xff] }
 0x202   :  { %1980 = vmatprep.subr.bf16.mxu1 %v1979_v56  ;;  %v2017_v56 = vpack.c.bf16 %v1100_v63, %v1098_v62  ;;  %v2019_v3 = vpack.c.bf16 %v1105_v2, %v1103_v1  ;;  %v1316_v1 = vld [vmem:[%s2850_s5 + $0xa0] sm:$0xff]  ;;  %v1317_v2 = vld [vmem:[%s2850_s5 + $0xa8] sm:$0xff] }
 0x205   :  { %1982 = vmatpush1.bf16.msra.mxu1 %v1981_v8  ;;  %v1016_v8 = vld [vmem:[#allocation3 + $0x10] sm:$0x3] }
 0x206   :  { %1984 = vmatprep.subr.bf16.mxu1 %v1983_v10  ;;  %v2021_v10 = vpack.c.bf16 %v1104_v57, %v1102_v4  ;;  %v1032_v14 = vrot.slane %v1016_v8, 2 }
 0x208   :  { %v1033_v19 = vsel %vm1030_vm7, %v1031_v13, %v1032_v14 }
 0x209   :  { %1986 = vmatpush1.bf16.msra.mxu1 %v1985_v15  ;;  %v1040_v15 = vrot.slane %v1019_v52, 2 }
 0x20a   :  { %1988 = vmatprep.subr.bf16.mxu1 %v1987_v43  ;;  %v1041_v43 = vrot.slane %v1021_v11, 2 }
 0x20d   :  { %1990 = vmatpush1.bf16.msra.mxu1 %v1989_v5  ;;  %v1038_v5 = vrot.slane %v1020_v17, 2 }
 0x20e   :  { %1992 = vmatprep.subr.bf16.mxu1 %v1991_v21  ;;  %v1042_v21 = vsel %vm1030_vm7, %v1040_v15, %v1041_v43 }
 0x20f   :  { %v1039_v12 = vsel %vm1030_vm7, %v1037_v20, %v1038_v5  ;;  %v1321_v20 = vld [vmem:[%s2850_s5 + $0xc8] sm:$0xff] }
 0x211   :  { %1994 = vmatpush1.bf16.msra.mxu1 %v1993_v0  ;;  %v2199_v0 = vmov 0.0|0.0  }
 0x212   :  { %1996 = vmatprep.subr.bf16.mxu1 %v1995_v25  ;;  %2023 = vmatprep.subr.bf16.mxu0 %v2199_v0  ;;  %v2024_v25 = vpack.c.bf16 %v1297_v23, %v1296_v22 }
 0x214   :  { %2025 = vmatpush1.bf16.msra.mxu0 %v2024_v25 }
 0x215   :  { %1998 = vmatpush1.bf16.msra.mxu1 %v1997_v18  ;;  %2026 = vmatprep.subr.bf16.mxu0 %v2199_v0  ;;  %v2030_v18 = vpack.c.bf16 %v1301_v26, %v1300_v30  ;;  %v1322_v30 = vld [vmem:[%s2850_s5 + $0xd0] sm:$0xff]  ;;  %v1323_v26 = vld [vmem:[%s2850_s5 + $0xd8] sm:$0xff] }
 0x216   :  { %2000 = vmatprep.subr.bf16.mxu1 %v1999_v31  ;;  %v1302_v31 = vld [vmem:[%s2850_s5 + $0x30] sm:$0xff] }
 0x217   :  { %v2033_v27 = vpack.c.bf16 %v1303_v32, %v1302_v31  ;;  %v2063_v32 = vpack.c.bf16 %v1323_v26, %v1322_v30  ;;  %v1441_v30 = vld [vmem:[%s2851_s6 + $0x50] sm:$0xff]  ;;  %v1442_v26 = vld [vmem:[%s2851_s6 + $0x58] sm:$0xff] }
 0x218   :  { %2028 = vmatpush1.bf16.msra.mxu0 %v2027_v29 }
 0x219   :  { %2002 = vmatpush1.bf16.msra.mxu1 %v2001_v36  ;;  %2029 = vmatprep.subr.bf16.mxu0 %v2199_v0  ;;  %v2036_v36 = vpack.c.bf16 %v1305_v34, %v1304_v33  ;;  %v1447_v33 = vld [vmem:[%s2851_s6 + $0x80] sm:$0xff]  ;;  %v1448_v34 = vld [vmem:[%s2851_s6 + $0x88] sm:$0xff] }
 0x21a   :  { %2004 = vmatprep.subr.bf16.mxu1 %v2003_v37  ;;  %v1306_v37 = vld [vmem:[%s2850_s5 + $0x50] sm:$0xff] }
 0x21b   :  { %v2039_v35 = vpack.c.bf16 %v1307_v38, %v1306_v37 }
 0x21c   :  { %2031 = vmatpush1.bf16.msra.mxu0 %v2030_v18 }
 0x21d   :  { %2006 = vmatpush1.bf16.msra.mxu1 %v2005_v41  ;;  %2032 = vmatprep.subr.bf16.mxu0 %v2199_v0  ;;  %v2042_v41 = vpack.c.bf16 %v1309_v40, %v1308_v39 }
 0x21e   :  { %2008 = vmatprep.subr.bf16.mxu1 %v2007_v42  ;;  %v1310_v42 = vld [vmem:[%s2850_s5 + $0x70] sm:$0xff] }
 0x21f   :  { %v2045_v45 = vpack.c.bf16 %v1311_v44, %v1310_v42 }
 0x220   :  { %2034 = vmatpush1.bf16.msra.mxu0 %v2033_v27 }
 0x221   :  { %2010 = vmatpush1.bf16.msra.mxu1 %v2009_v48  ;;  %2035 = vmatprep.subr.bf16.mxu0 %v2199_v0  ;;  %v2048_v48 = vpack.c.bf16 %v1313_v47, %v1312_v46 }
 0x222   :  { %2012 = vmatprep.subr.bf16.mxu1 %v2011_v49  ;;  %v1314_v49 = vld [vmem:[%s2850_s5 + $0x90] sm:$0xff] }
 0x223   :  { %v2051_v55 = vpack.c.bf16 %v1315_v54, %v1314_v49 }
 0x224   :  { %2037 = vmatpush1.bf16.msra.mxu0 %v2036_v36  ;;  %v2065_v36 = vpack.c.bf16 %v1448_v34, %v1447_v33  ;;  %v1444_v33 = vld [vmem:[%s2851_s6 + $0x68] sm:$0xff] }
 0x225   :  { %2014 = vmatpush1.bf16.msra.mxu1 %v2013_v60  ;;  %2038 = vmatprep.subr.bf16.mxu0 %v2199_v0  ;;  %v1200_v60 = vrot.slane %v1191_v58, %v428_v53  ;;  %v1318_v53 = vld [vmem:[%s2850_s5 + $0xb0] sm:$0xff] }
 0x226   :  { %2016 = vmatprep.subr.bf16.mxu1 %v2015_v61 }
 0x228   :  { %2040 = vmatpush1.bf16.msra.mxu0 %v2039_v35 }
 0x229   :  { %2018 = vmatpush1.bf16.msra.mxu1 %v2017_v56  ;;  %2041 = vmatprep.subr.bf16.mxu0 %v2199_v0 }
 0x22a   :  { %2020 = vmatprep.subr.bf16.mxu1 %v2019_v3  ;;  %v2054_v3 = vpack.c.bf16 %v1317_v2, %v1316_v1  ;;  %v1449_v1 = vld [vmem:[%s2851_s6 + $0x90] sm:$0xff]  ;;  %v1450_v2 = vld [vmem:[%s2851_s6 + $0x98] sm:$0xff] }
 0x22c   :  { %2043 = vmatpush1.bf16.msra.mxu0 %v2042_v41 }
 0x22d   :  { %2022 = vmatpush1.bf16.msra.mxu1 %v2021_v10  ;;  %2044 = vmatprep.subr.bf16.mxu0 %v2199_v0  ;;  %v1319_v10 = vld [vmem:[%s2850_s5 + $0xb8] sm:$0xff] }
 0x22e   :  { %v2057_v14 = vpack.c.bf16 %v1319_v10, %v1318_v53  ;;  %v1452_v53 = vld [vmem:[%s2851_s6 + $0xa8] sm:$0xff] }
 0x230   :  { %1175 = vmatmul.mubr.f32.vlgmr.msra.gmra.mrb[0].mxu1 %v1033_v19  ;;  %2046 = vmatpush1.bf16.msra.mxu0 %v2045_v45  ;;  %v1320_v19 = vld [vmem:[%s2850_s5 + $0xc0] sm:$0xff] }
 0x231   :  { %1734 = vmatprep.mubr.msk.f32.mxu1 %vm592_vm3, %v1042_v21  ;;  %2047 = vmatprep.subr.bf16.mxu0 %v2199_v0  ;;  %v2060_v23 = vpack.c.bf16 %v1321_v20, %v1320_v19  ;;  %v1438_v19 = vld [vmem:[%s2851_s6 + $0x38] sm:$0xff]  ;;  %v1455_v20 = vld [vmem:[%s2851_s6 + $0xc0] sm:$0xff] }
 0x234   :  { %1181 = vmatmul.mubr.f32.gmra.mrb[2].mxu1 %v1039_v12  ;;  %2049 = vmatpush1.bf16.msra.mxu0 %v2048_v48 }
 0x235   :  { %2050 = vmatprep.subr.bf16.mxu0 %v2199_v0 }
 0x238   :  { %2052 = vmatpush1.bf16.msra.mxu0 %v2051_v55 }
 0x239   :  { %2053 = vmatprep.subr.bf16.mxu0 %v2199_v0 }
 0x23c   :  { %2055 = vmatpush1.bf16.msra.mxu0 %v2054_v3 }
 0x23d   :  { %2056 = vmatprep.subr.bf16.mxu0 %v2199_v0 }
 0x240   :  { %2058 = vmatpush1.bf16.msra.mxu0 %v2057_v14  ;;  %v1453_v14 = vld [vmem:[%s2851_s6 + $0xb0] sm:$0xff] }
 0x241   :  { %2059 = vmatprep.subr.bf16.mxu0 %v2199_v0 }
 0x244   :  { %2061 = vmatpush1.bf16.msra.mxu0 %v2060_v23  ;;  %v1440_v23 = vld [vmem:[%s2851_s6 + $0x48] sm:$0xff] }
 0x245   :  { %2062 = vmatprep.subr.bf16.mxu0 %v2199_v0 }
 0x248   :  { %2064 = vmatpush1.bf16.msra.mxu0 %v2063_v32  ;;  %v2087_v32 = vpack.c.bf16 %v1442_v26, %v1441_v30  ;;  %v1492_v30 = vld [vmem:[%s2851_s6 + $0x1e8] sm:$0xff] }
 0x249   :  { %2066 = vmatprep.subr.bf16.mxu0 %v2065_v36  ;;  %v1461_v36 = vld [vmem:[%s2851_s6 + $0xf0] sm:$0xff] }
 0x303   :  { %v1176_v61 = vpop.f32.mrb[0].mxu1 }
 0x304   :  { %v1203_v62 = vadd.f32 %v1196_v59, %v1176_v61  ;;  %v1178_v63 = vpop.f32.mrb[1].mxu1  ;;  %v1432_v61 = vld [vmem:[%s2851_s6 + $0x8] sm:$0xff] }
 0x305   :  { %v1204_v56 = vadd.f32 %v1200_v60, %v1178_v63 }
 0x306   :  { %v1207_v4 = vmax.f32 %v1203_v62, 0.0 }
 0x307   :  { %v1208_v57 = vmax.f32 %v1204_v56, 0.0  ;;  %v1182_v7 = vpop.f32.mrb[2].mxu1 }
 0x308   :  { %v1205_v51 = vadd.f32 %v1196_v59, %v1182_v7  ;;  %v1184_v8 = vpop.f32.mrb[3].mxu1  ;;  %v1433_v7 = vld [vmem:[%s2851_s6 + $0x10] sm:$0xff] }
 0x309   :  { %v1215_v52 = vcombine.low %v1207_v4, %v1208_v57  ;;  %v1216_v11 = vcombine.high %v1207_v4, %v1208_v57  ;;  %v1206_v13 = vadd.f32 %v1200_v60, %v1184_v8  ;;  %v1431_v60 = vld [vmem:[%s2851_s6] sm:$0xff]  ;;  %v2069_v57 = vpack.c.bf16 %v1450_v2, %v1449_v1 }
 0x30a   :  { %v1209_v15 = vmax.f32 %v1205_v51, 0.0  ;;  %v2067_v4 = vpack.c.bf16 %v1432_v61, %v1431_v60  ;;  %v1434_v51 = vld [vmem:[%s2851_s6 + $0x18] sm:$0xff]  ;;  %v1451_v8 = vld [vmem:[%s2851_s6 + $0xa0] sm:$0xff]  ;;  %v1481_v61 = vld [vmem:[%s2851_s6 + $0x190] sm:$0xff] }
 0x30b   :  { %v1229_v43 = vrot.slane %v1215_v52, %v2436_v9  ;;  %v1236_v16 = vrot.slane %v1216_v11, %v2436_v9  ;;  %v1210_v17 = vmax.f32 %v1206_v13, 0.0  ;;  %v2071_v10 = vpack.c.bf16 %v1434_v51, %v1433_v7  ;;  %v1435_v11 = vld [vmem:[%s2851_s6 + $0x20] sm:$0xff]  ;;  %v1436_v13 = vld [vmem:[%s2851_s6 + $0x28] sm:$0xff] }
 0x30c   :  { %v2073_v52 = vpack.c.bf16 %v1452_v53, %v1451_v8  ;;  %v1483_v7 = vld [vmem:[%s2851_s6 + $0x1a0] sm:$0xff]  ;;  %v1484_v51 = vld [vmem:[%s2851_s6 + $0x1a8] sm:$0xff] }
 0x30d   :  { %v1217_v5 = vcombine.low %v1209_v15, %v1210_v17  ;;  %v1218_v21 = vcombine.high %v1209_v15, %v1210_v17  ;;  %v1256_v12 = vrot.slane %v1236_v16, 4  ;;  %v1255_v22 = vrot.slane %v1229_v43, 4  ;;  %v1454_v15 = vld [vmem:[%s2851_s6 + $0xb8] sm:$0xff]  ;;  %v1437_v17 = vld [vmem:[%s2851_s6 + $0x30] sm:$0xff]  ;;  %v1467_v53 = vld [vmem:[%s2851_s6 + $0x120] sm:$0xff] }
 0x30e   :  { %v2105_v8 = vpack.c.bf16 %v1484_v51, %v1483_v7 }
 0x30f   :  { %v1243_v24 = vrot.slane %v1217_v5, %v2436_v9  ;;  %v1250_v25 = vrot.slane %v1218_v21, %v2436_v9  ;;  %v1264_v28 = vmax.f32 %v1236_v16, %v1256_v12  ;;  %v1263_v29 = vmax.f32 %v1229_v43, %v1255_v22  ;;  %v1456_v5 = vld [vmem:[%s2851_s6 + $0xc8] sm:$0xff]  ;;  %v1439_v22 = vld [vmem:[%s2851_s6 + $0x40] sm:$0xff] }
 0x310   :  { %v2075_v43 = vpack.c.bf16 %v1436_v13, %v1435_v11  ;;  %v2077_v16 = vpack.c.bf16 %v1454_v15, %v1453_v14  ;;  %v2079_v21 = vpack.c.bf16 %v1438_v19, %v1437_v17  ;;  %v2081_v12 = vpack.c.bf16 %v1456_v5, %v1455_v20  ;;  %v1486_v11 = vld [vmem:[%s2851_s6 + $0x1b8] sm:$0xff]  ;;  %v1469_v15 = vld [vmem:[%s2851_s6 + $0x130] sm:$0xff]  ;;  %v1488_v17 = vld [vmem:[%s2851_s6 + $0x1c8] sm:$0xff] }
 0x311   :  { %1273 = vrot.lane.b32.xlu1 %v1264_v28, %s2200_s21  ;;  %1271 = vrot.lane.b32.xlu0 %v1263_v29, %s2200_s21  ;;  %v1258_v18 = vrot.slane %v1250_v25, 4  ;;  %v1257_v31 = vrot.slane %v1243_v24, 4  ;;  %v1471_v5 = vld [vmem:[%s2851_s6 + $0x140] sm:$0xff] }
 0x313   :  { %v1266_v9 = vmax.f32 %v1250_v25, %v1258_v18  ;;  %v1265_v27 = vmax.f32 %v1243_v24, %v1257_v31  ;;  %v1457_v24 = vld [vmem:[%s2851_s6 + $0xd0] sm:$0xff]  ;;  %v1458_v25 = vld [vmem:[%s2851_s6 + $0xd8] sm:$0xff]  ;;  %v1459_v18 = vld [vmem:[%s2851_s6 + $0xe0] sm:$0xff] }
 0x314   :  { %v1460_v31 = vld [vmem:[%s2851_s6 + $0xe8] sm:$0xff] }
 0x315   :  { %1277 = vrot.lane.b32.xlu1 %v1266_v9, %s2200_s21  ;;  %1275 = vrot.lane.b32.xlu0 %v1265_v27, %s2200_s21 }
 0x383   :  { %v1274_v37 = vpop.permute.xlu1 %1273  ;;  %v1272_v38 = vpop.permute.xlu0 %1271 }
 0x384   :  { %v1280_v35 = vrot.slane %v1274_v37, 2  ;;  %v1279_v0 = vrot.slane %v1272_v38, 2 }
 0x386   :  { %v1285_v39 = vsel %vm1283_vm8, %v1274_v37, %v1280_v35  ;;  %v1284_v40 = vsel %vm1283_vm8, %v1272_v38, %v1279_v0  ;;  %v1462_v37 = vld [vmem:[%s2851_s6 + $0xf8] sm:$0xff]  ;;  %v1445_v35 = vld [vmem:[%s2851_s6 + $0x70] sm:$0xff] }
 0x387   :  { %v1293_v41 = vmax.f32 %v1264_v28, %v1285_v39  ;;  %v1292_v42 = vmax.f32 %v1263_v29, %v1284_v40  ;;  %v1278_v44 = vpop.permute.xlu1 %1277  ;;  %v1276_v45 = vpop.permute.xlu0 %1275  ;;  %v2083_v28 = vpack.c.bf16 %v1440_v23, %v1439_v22  ;;  %v2085_v29 = vpack.c.bf16 %v1458_v25, %v1457_v24  ;;  %v1446_v0 = vld [vmem:[%s2851_s6 + $0x78] sm:$0xff]  ;;  %v1479_v40 = vld [vmem:[%s2851_s6 + $0x180] sm:$0xff]  ;;  %v1473_v25 = vld [vmem:[%s2851_s6 + $0x150] sm:$0xff] }
 0x388   :  { %v1282_v46 = vrot.slane %v1278_v44, 2  ;;  %v1281_v47 = vrot.slane %v1276_v45, 2  ;;  %v2093_v38 = vpack.c.bf16 %v1462_v37, %v1461_v36  ;;  %v2095_v39 = vpack.c.bf16 %v1446_v0, %v1445_v35  ;;  %v1490_v22 = vld [vmem:[%s2851_s6 + $0x1d8] sm:$0xff]  ;;  %v1477_v36 = vld [vmem:[%s2851_s6 + $0x170] sm:$0xff] }
 0x389   :  { %v1328_v54 = vcombine.low %v1292_v42, %v1293_v41  ;;  %v1480_v41 = vld [vmem:[%s2851_s6 + $0x188] sm:$0xff]  ;;  %v1478_v37 = vld [vmem:[%s2851_s6 + $0x178] sm:$0xff] }
 0x38a   :  { %v1287_v48 = vsel %vm1283_vm8, %v1278_v44, %v1282_v46  ;;  %v1286_v49 = vsel %vm1283_vm8, %v1276_v45, %v1281_v47  ;;  %v2097_v42 = vpack.c.bf16 %v1480_v41, %v1479_v40  ;;  %v2201_v44 = vmov 1935823168   ;;  %v1736_v40 = vld [vmem:[%s2852_s7] ss:$0 sm:$0xff] }
 0x38b   :  { %v1295_v55 = vmax.f32 %v1266_v9, %v1287_v48  ;;  %v1294_v58 = vmax.f32 %v1265_v27, %v1286_v49  ;;  %v1336_v62 = vrot.slane %v1328_v54, %v2488_v6  ;;  %v2089_v9 = vpack.c.bf16 %v1460_v31, %v1459_v18  ;;  %v1443_v27 = vld [vmem:[%s2851_s6 + $0x60] sm:$0xff] }
 0x38c   :  { %v2091_v34 = vpack.c.bf16 %v1444_v33, %v1443_v27  ;;  %v1425_v45 = vunpack.c.l.s4 %v2201_v44  ;;  %v1475_v31 = vld [vmem:[%s2851_s6 + $0x160] sm:$0xff]  ;;  %v1494_v27 = vld [vmem:[%s2851_s6 + $0x1f8] sm:$0xff] }
 0x38d   :  { %v1329_v59 = vcombine.low %v1294_v58, %v1295_v55  ;;  %v1463_v58 = vld [vmem:[%s2851_s6 + $0x100] sm:$0xff] }
 0x38e   :  { %v1426_v46 = vunpack.c.0.s8 %v1425_v45 }
 0x38f   :  { %v1343_v63 = vrot.slane %v1329_v59, %v2488_v6  ;;  %v1464_v59 = vld [vmem:[%s2851_s6 + $0x108] sm:$0xff] }
 0x390   :  { %v1429_v47 = vsub.s32 %v1426_v46, %v2421_v50  ;;  %v2099_v1 = vpack.c.bf16 %v1464_v59, %v1463_v58 }
 0x391   :  { %v1344_v56 = vcombine.low %v1336_v62, %v1343_v63  ;;  %v1345_v3 = vcombine.high %v1336_v62, %v1343_v63  ;;  %v1482_v62 = vld [vmem:[%s2851_s6 + $0x198] sm:$0xff] }
 0x393   :  { %1735 = vmatprep.mubr.msk.f32.mxu0 %vm1283_vm8, %v1345_v3  ;;  %v1465_v3 = vld [vmem:[%s2851_s6 + $0x110] sm:$0xff] }
 0x394   :  { %1414 = vmatmul.mubr.f32.vlgmr.msra.gmra.mrb[8].mxu0 %v1344_v56  ;;  %v2101_v56 = vpack.c.bf16 %v1482_v62, %v1481_v61 }
 0x395   :  { %2068 = vmatpush3.bf16.msra.mxu0 %v2067_v4  ;;  %v1466_v4 = vld [vmem:[%s2851_s6 + $0x118] sm:$0xff] }
 0x396   :  { %2070 = vmatprep.subr.bf16.mxu0 %v2069_v57 }
 0x399   :  { %2072 = vmatpush3.bf16.msra.mxu0 %v2071_v10  ;;  %v1468_v10 = vld [vmem:[%s2851_s6 + $0x128] sm:$0xff] }
 0x39a   :  { %2074 = vmatprep.subr.bf16.mxu0 %v2073_v52  ;;  %v1485_v52 = vld [vmem:[%s2851_s6 + $0x1b0] sm:$0xff]  ;;  %v2107_v13 = vpack.c.bf16 %v1468_v10, %v1467_v53 }
 0x39b   :  { %v2109_v14 = vpack.c.bf16 %v1486_v11, %v1485_v52 }
 0x39d   :  { %2076 = vmatpush3.bf16.msra.mxu0 %v2075_v43  ;;  %v1470_v43 = vld [vmem:[%s2851_s6 + $0x138] sm:$0xff] }
 0x39e   :  { %2078 = vmatprep.subr.bf16.mxu0 %v2077_v16  ;;  %v1487_v16 = vld [vmem:[%s2851_s6 + $0x1c0] sm:$0xff]  ;;  %v2111_v19 = vpack.c.bf16 %v1470_v43, %v1469_v15 }
 0x39f   :  { %v2113_v20 = vpack.c.bf16 %v1488_v17, %v1487_v16 }
 0x3a1   :  { %2080 = vmatpush3.bf16.msra.mxu0 %v2079_v21  ;;  %v1472_v21 = vld [vmem:[%s2851_s6 + $0x148] sm:$0xff] }
 0x3a2   :  { %2082 = vmatprep.subr.bf16.mxu0 %v2081_v12  ;;  %v1489_v12 = vld [vmem:[%s2851_s6 + $0x1d0] sm:$0xff]  ;;  %v2115_v23 = vpack.c.bf16 %v1472_v21, %v1471_v5 }
 0x3a3   :  { %v2117_v24 = vpack.c.bf16 %v1490_v22, %v1489_v12 }
 0x3a5   :  { %2084 = vmatpush3.bf16.msra.mxu0 %v2083_v28  ;;  %v1474_v28 = vld [vmem:[%s2851_s6 + $0x158] sm:$0xff] }
 0x3a6   :  { %2086 = vmatprep.subr.bf16.mxu0 %v2085_v29  ;;  %v1491_v29 = vld [vmem:[%s2851_s6 + $0x1e0] sm:$0xff]  ;;  %v2119_v26 = vpack.c.bf16 %v1474_v28, %v1473_v25 }
 0x3a7   :  { %v2121_v18 = vpack.c.bf16 %v1492_v30, %v1491_v29 }
 0x3a9   :  { %2088 = vmatpush3.bf16.msra.mxu0 %v2087_v32  ;;  %v1476_v32 = vld [vmem:[%s2851_s6 + $0x168] sm:$0xff] }
 0x3aa   :  { %2090 = vmatprep.subr.bf16.mxu0 %v2089_v9  ;;  %v1493_v9 = vld [vmem:[%s2851_s6 + $0x1f0] sm:$0xff]  ;;  %v2123_v33 = vpack.c.bf16 %v1476_v32, %v1475_v31  ;;  %s2202_s6 = smov 8  }
 0x3ad   :  { %2092 = vmatpush3.bf16.msra.mxu0 %v2091_v34  ;;  %v2125_v34 = vpack.c.bf16 %v1494_v27, %v1493_v9 }
 0x3ae   :  { %2094 = vmatprep.subr.bf16.mxu0 %v2093_v38  ;;  %v2127_v38 = vpack.c.bf16 %v1478_v37, %v1477_v36 }
 0x3b1   :  { %2096 = vmatpush3.bf16.msra.mxu0 %v2095_v39 }
 0x3b2   :  { %2098 = vmatprep.subr.bf16.mxu0 %v2097_v42 }
 0x467   :  { %v1415_v48 = vpop.f32.mrb[8].mxu0 }
 0x468   :  { %v1420_v49 = vcombine.high %v1415_v48, %v1415_v48  ;;  %1422 = vst [vmem:[%s2853_s8] sm:$0xf] %v1415_v48  ;;  %v1430_v54 = vrot.slane %v1415_v48, %v1429_v47  ;;  %v1417_v55 = vpop.f32.mrb[9].mxu0 }
 0x46a   :  { %1423 = vst [vmem:[%s2853_s8 + $0x4] sm:$0xf] %v1420_v49  ;;  %v1503_v50 = vcombine.high %v1430_v54, %v1430_v54  ;;  %v1510_v60 = vrot.slane %v1430_v54, %v2488_v6 }
 0x46c   :  { %v1518_v63 = vcombine.high %v1510_v60, %v1510_v60  ;;  %v1517_v2 = vrot.slane %v1503_v50, %v2488_v6  ;;  %v2103_v6 = vpack.c.bf16 %v1466_v4, %v1465_v3 }
 0x46e   :  { %1588 = vmatprep.mubr.f32.mxu0 %v1518_v63  ;;  %v1519_v57 = vcombine.high %v1517_v2, %v1517_v2 }
 0x46f   :  { %1589 = vmatmul.mubr.f32.vlgmr.msra.gmra.mrb[10].mxu0 %v1510_v60 }
 0x470   :  { %2100 = vmatpush3.bf16.msra.mxu0 %v2099_v1  ;;  %1658 = vmatprep.mubr.f32.mxu0 %v1519_v57 }
 0x471   :  { %2102 = vmatprep.subr.bf16.mxu0 %v2101_v56 }
 0x474   :  { %2104 = vmatpush3.bf16.msra.mxu0 %v2103_v6 }
 0x475   :  { %2106 = vmatprep.subr.bf16.mxu0 %v2105_v8 }
 0x478   :  { %2108 = vmatpush3.bf16.msra.mxu0 %v2107_v13 }
 0x479   :  { %2110 = vmatprep.subr.bf16.mxu0 %v2109_v14 }
 0x47c   :  { %2112 = vmatpush3.bf16.msra.mxu0 %v2111_v19 }
 0x47d   :  { %2114 = vmatprep.subr.bf16.mxu0 %v2113_v20 }
 0x480   :  { %2116 = vmatpush3.bf16.msra.mxu0 %v2115_v23 }
 0x481   :  { %2118 = vmatprep.subr.bf16.mxu0 %v2117_v24 }
 0x484   :  { %2120 = vmatpush3.bf16.msra.mxu0 %v2119_v26 }
 0x485   :  { %2122 = vmatprep.subr.bf16.mxu0 %v2121_v18 }
 0x488   :  { %2124 = vmatpush3.bf16.msra.mxu0 %v2123_v33 }
 0x489   :  { %2126 = vmatprep.subr.bf16.mxu0 %v2125_v34 }
 0x48c   :  { %2128 = vmatpush3.bf16.msra.mxu0 %v2127_v38 }
 0x48f   :  { %1659 = vmatmul.mubr.f32.vlgmr.msra.gmra.mrb[12].mxu0 %v1517_v2 }
 0x542   :  { %v1769_v35 = vpop.f32.mrb[10].mxu0 }
 0x543   :  { %v1770_v0 = vpop.f32.mrb[11].mxu0 }
 0x544   :  { %v1771_v39 = vadd.f32 %v1770_v0, %v1769_v35 }
 0x546   :  { %v1591_v44 = vadd.f32 %v1771_v39, %v1736_v40 }
 0x562   :  { %v1804_v41 = vpop.f32.mrb[12].mxu0 }
 0x563   :  { %v1805_v42 = vpop.f32.mrb[13].mxu0 }
 0x564   :  { %v1806_v45 = vadd.f32 %v1805_v42, %v1804_v41 }
 0x566   :  { %v1661_v46 = vadd.f32 %v1806_v45, %v1591_v44 }
 0x568   :  { %v1665_v47 = vsel %vm1664_vm9, %v1661_v46, -inf }
 0x569   :  { %1666 = vmax.xlane.f32.xlu0 %v1665_v47 }
 0x5f6   :  { %v1667_v48 = vpop.xlane.xlu0 %1666 }
 0x5f7   :  { %v1668_v49 = vsub.f32 %v1661_v46, %v1667_v48 }
 0x5f9   :  { %v1669_v54 = vmul.f32 1.442695, %v1668_v49 }
 0x5fb   :  { %2164 = vpow2.f32 %v1669_v54 }
 0x605   :  { %v2165_v55 = vpop.eup %2164 }
 0x606   :  { %v1671_v58 = vsel %vm1664_vm9, %v2165_v55, 0.0 }
 0x607   :  { %1672 = vadd.xlane.f32.xlu1 %v1671_v58 }
 0x694   :  { %v1673_v59 = vpop.xlane.xlu1 %1672 }
 0x695   :  { %2166 = vrcp.f32 %v1673_v59 }
 0x69f   :  { %v2167_v50 = vpop.eup %2166 }
 0x6a0   :  { %v1675_v60 = vmul.f32 %v2167_v50, %v2165_v55 }
 0x6a2   :  { %1677 = vrot.lane.b32.xlu0 %v1675_v60, %s2202_s6 }
 0x714   :  { %v1678_v61 = vpop.permute.xlu0 %1677 }
 0x715   :  { %v1681_v62 = vsel %vm1680_vm10, %v1661_v46, %v1678_v61 }
 0x716   :  { %1683 = vst.msk [vmem:[%s2854_s9] sm:$0x3] %vm1682_vm11, %v1681_v62 }
 0x717   :  { %1692 = vsyncpa [#allocation5], 1 }

</bundles_post_ra>
